<compile_context>
chip_gen: v7x
topology: tpu7x:2x2x1
jax: 0.10.0
libtpu: 0.0.40
codegen_flags: <defaults>
</compile_context>

<pallas_src>
import functools

import numpy as np
import jax
import jax.numpy as jnp
from jax.experimental import pallas as pl
from jax.experimental.pallas import tpu as pltpu  # noqa: F401  (kept for TPU-specific tweaks)


# ----------------------------- Pallas kernel ------------------------------- #

def make_lstm_kernel(B, T, D_in, H, num_layers, pred_len, O):
    """Builds the fused multi-layer LSTM (+ FC) kernel for static shapes."""

    def kernel(*refs):
        x_ref = refs[0]                              # (B*T, D_in) batch-major rows b*T+t
        p_ref = refs[1]                              # (T*B, B*T)  batch-major -> time-major perm
        layer_refs = refs[2:2 + 3 * num_layers]      # per layer: W_ih^T, W_hh^T, bias
        fcw_ref = refs[2 + 3 * num_layers]           # (H, O)
        fcb_ref = refs[3 + 3 * num_layers]           # (1, O)
        out_ref = refs[4 + 3 * num_layers]           # (B, pred_len*O)

        f32 = jnp.float32

        # Reorder the (tiny) input to time-major on the MXU: row t*B+b of x_tm == x[b, t, :].
        x_tm = jnp.dot(p_ref[...], x_ref[...], preferred_element_type=f32)   # (T*B, D_in)

        # Load all weights once; they stay vreg/VMEM resident across the unrolled loops.
        wih = [layer_refs[3 * l][...] for l in range(num_layers)]        # (D_l, 4H)
        whh = [layer_refs[3 * l + 1][...] for l in range(num_layers)]    # (H, 4H)
        bia = [layer_refs[3 * l + 2][...] for l in range(num_layers)]    # (1, 4H)
        fc_w = fcw_ref[...]                                              # (H, O)
        fc_b = fcb_ref[...]                                              # (1, O)

        # Hoist the per-step bias broadcast for layers >= 1 (broadcast_in_dim is not CSE'd).
        bia_b = [None] + [jnp.broadcast_to(bia[l], (B, 4 * H)) for l in range(1, num_layers)]

        # Layer-0 input projection hoisted over all T steps: one batched MXU matmul,
        # independent of the recurrence.
        gx0 = jnp.dot(x_tm, wih[0], preferred_element_type=f32) + bia[0]    # (T*B, 4H)

        h = [jnp.zeros((B, H), f32) for _ in range(num_layers)]
        c = [jnp.zeros((B, H), f32) for _ in range(num_layers)]
        last = num_layers - 1

        # Wavefront ordering: fully unrolled (t, layer) steps in one basic block.
        for t in range(T):
            for l in range(num_layers):
                if l == 0:
                    gates = (gx0[t * B:(t + 1) * B, :]
                             + jnp.dot(h[0], whh[0], preferred_element_type=f32))
                else:
                    gates = (jnp.dot(h[l - 1], wih[l], preferred_element_type=f32)
                             + jnp.dot(h[l], whh[l], preferred_element_type=f32)
                             + bia_b[l])

                sg = jax.nn.sigmoid(gates)                 # full-vreg EUP pass
                i_g = sg[:, 0 * H:1 * H]
                f_g = sg[:, 1 * H:2 * H]
                o_g = sg[:, 3 * H:4 * H]
                g_g = jnp.tanh(gates[:, 2 * H:3 * H])      # EUP only on the g slice

                c[l] = f_g * c[l] + i_g * g_g
                h[l] = o_g * jnp.tanh(c[l])

            if t >= T - pred_len:
                # Fused FC epilogue on the top layer: y_t = h_t @ fc_w + fc_b.
                j = t - (T - pred_len)
                y = jnp.dot(h[last], fc_w, preferred_element_type=f32) + fc_b
                out_ref[:, j * O:(j + 1) * O] = y.astype(out_ref.dtype)

    return kernel


# ------------------------------ Wrapper ------------------------------------ #

@functools.partial(jax.jit, static_argnames=("pred_len",))
def lstm_model_forward(x_enc, params, pred_len):
    """Replicates LSTM.forward (x_mark_enc=None). x_enc: (B, T, input_size)."""
    B, T, D = x_enc.shape
    layers = params["layers"]
    num_layers = len(layers)
    H = layers[0][1].shape[0]
    O = params["fc_w_t"].shape[1]

    # Free, layout-preserving reshape; no transpose ops in the wrapper.
    x2d = x_enc.astype(jnp.float32).reshape(B * T, D)

    # Constant permutation matrix: time-major row t*B+b <- batch-major row b*T+t.
    perm = np.zeros((T * B, B * T), np.float32)
    for i in range(T * B):
        t, b = divmod(i, B)
        perm[i, b * T + t] = 1.0
    perm = jnp.asarray(perm)

    inputs = [x2d, perm]
    for (w_ih_t, w_hh_t, bias) in layers:
        inputs += [w_ih_t, w_hh_t, bias]
    inputs += [params["fc_w_t"], params["fc_b"]]

    in_specs = [pl.BlockSpec(a.shape, lambda: (0, 0)) for a in inputs]

    kernel = make_lstm_kernel(B, T, D, H, num_layers, pred_len, O)
    out2d = pl.pallas_call(
        kernel,
        out_shape=jax.ShapeDtypeStruct((B, pred_len * O), jnp.float32),
        in_specs=in_specs,
        out_specs=pl.BlockSpec((B, pred_len * O), lambda: (0, 0)),
    )(*inputs)

    return out2d.reshape(B, pred_len, O)               # free reshape (row-major bitcast)


# ----------------------- Deterministic parameter init ---------------------- #

def init_params(key, input_size, hidden_size, num_layers, output_size):
    """PyTorch-style U(-1/sqrt(H), 1/sqrt(H)) init; deterministic from `key`."""
    k = 1.0 / jnp.sqrt(jnp.float32(hidden_size))
    layers = []
    for l in range(num_layers):
        d_in = input_size if l == 0 else hidden_size
        key, k1, k2, k3, k4 = jax.random.split(key, 5)
        w_ih = jax.random.uniform(k1, (4 * hidden_size, d_in), jnp.float32, -k, k)
        w_hh = jax.random.uniform(k2, (4 * hidden_size, hidden_size), jnp.float32, -k, k)
        b_ih = jax.random.uniform(k3, (4 * hidden_size,), jnp.float32, -k, k)
        b_hh = jax.random.uniform(k4, (4 * hidden_size,), jnp.float32, -k, k)
        layers.append((w_ih.T, w_hh.T, (b_ih + b_hh)[None, :]))   # pre-transposed, bias pre-summed
    key, k5, k6 = jax.random.split(key, 3)
    fc_w = jax.random.uniform(k5, (output_size, hidden_size), jnp.float32, -k, k)
    fc_b = jax.random.uniform(k6, (output_size,), jnp.float32, -k, k)
    return {"layers": layers, "fc_w_t": fc_w.T, "fc_b": fc_b[None, :]}


# ----------------------- Pure-JAX reference (for check) -------------------- #

def reference_forward(x_enc, params, pred_len):
    B, T, _ = x_enc.shape
    h_seq = x_enc.astype(jnp.float32)
    for (w_ih_t, w_hh_t, bias) in params["layers"]:
        H = w_hh_t.shape[0]
        h = jnp.zeros((B, H), jnp.float32)
        c = jnp.zeros((B, H), jnp.float32)
        outs = []
        for t in range(T):
            gates = h_seq[:, t, :] @ w_ih_t + h @ w_hh_t + bias
            i = jax.nn.sigmoid(gates[:, 0 * H:1 * H])
            f = jax.nn.sigmoid(gates[:, 1 * H:2 * H])
            g = jnp.tanh(gates[:, 2 * H:3 * H])
            o = jax.nn.sigmoid(gates[:, 3 * H:4 * H])
            c = f * c + i * g
            h = o * jnp.tanh(c)
            outs.append(h)
        h_seq = jnp.stack(outs, axis=1)
    tail = h_seq[:, -pred_len:, :]
    return tail @ params["fc_w_t"] + params["fc_b"]


# --------------------------------- Main ------------------------------------ #

if __name__ == "__main__":
    # Small shapes implied by the module's forward.
    batch, seq_len = 2, 8
    input_size, hidden_size, num_layers = 4, 32, 2
    output_size, pred_len = 4, 4

    key = jax.random.PRNGKey(0)
    key, kx = jax.random.split(key)
    x_enc = jax.random.normal(kx, (batch, seq_len, input_size), jnp.float32)

    params = init_params(key, input_size, hidden_size, num_layers, output_size)

    out = lstm_model_forward(x_enc, params, pred_len=pred_len)
    out = jax.block_until_ready(out)

    ref = reference_forward(x_enc, params, pred_len)
    assert out.shape == (batch, pred_len, output_size)
    assert jnp.allclose(out, ref, atol=1e-4, rtol=1e-4), "mismatch vs reference"

    print("KERNEL_OK")
</pallas_src>

<mosaic_0001>
module attributes {stable_mosaic.version = 11 : i64} {
  func.func @kernel(%arg0: memref<16x4xf32, #tpu.memory_space<vmem>>, %arg1: memref<16x16xf32, #tpu.memory_space<vmem>>, %arg2: memref<4x128xf32, #tpu.memory_space<vmem>>, %arg3: memref<32x128xf32, #tpu.memory_space<vmem>>, %arg4: memref<1x128xf32, #tpu.memory_space<vmem>>, %arg5: memref<32x128xf32, #tpu.memory_space<vmem>>, %arg6: memref<32x128xf32, #tpu.memory_space<vmem>>, %arg7: memref<1x128xf32, #tpu.memory_space<vmem>>, %arg8: memref<32x4xf32, #tpu.memory_space<vmem>>, %arg9: memref<1x4xf32, #tpu.memory_space<vmem>>, %arg10: memref<2x16xf32, #tpu.memory_space<vmem>>) attributes {dimension_semantics = [], scalar_prefetch = 0 : i64, scratch_operands = 0 : i64, tpu.core_type = #tpu.core_type<tc>} {
    %c0 = arith.constant 0 : index
    %c0_0 = arith.constant 0 : index
    %0 = vector.load %arg1[%c0, %c0_0] : memref<16x16xf32, #tpu.memory_space<vmem>>, vector<16x16xf32>
    %c0_1 = arith.constant 0 : index
    %c0_2 = arith.constant 0 : index
    %1 = vector.load %arg0[%c0_1, %c0_2] : memref<16x4xf32, #tpu.memory_space<vmem>>, vector<16x4xf32>
    %cst = arith.constant dense<0.000000e+00> : vector<16x4xf32>
    %2 = tpu.matmul %0, %1, %cst {dimension_numbers = #tpu.dot_dimension_numbers<[1], [0], [0], [1], [0, 0, 1, 1], [], []>} : vector<16x16xf32>, vector<16x4xf32>, vector<16x4xf32> -> vector<16x4xf32>
    %c0_3 = arith.constant 0 : index
    %c0_4 = arith.constant 0 : index
    %3 = vector.load %arg2[%c0_3, %c0_4] : memref<4x128xf32, #tpu.memory_space<vmem>>, vector<4x128xf32>
    %c0_5 = arith.constant 0 : index
    %c0_6 = arith.constant 0 : index
    %4 = vector.load %arg5[%c0_5, %c0_6] : memref<32x128xf32, #tpu.memory_space<vmem>>, vector<32x128xf32>
    %c0_7 = arith.constant 0 : index
    %c0_8 = arith.constant 0 : index
    %5 = vector.load %arg3[%c0_7, %c0_8] : memref<32x128xf32, #tpu.memory_space<vmem>>, vector<32x128xf32>
    %c0_9 = arith.constant 0 : index
    %c0_10 = arith.constant 0 : index
    %6 = vector.load %arg6[%c0_9, %c0_10] : memref<32x128xf32, #tpu.memory_space<vmem>>, vector<32x128xf32>
    %c0_11 = arith.constant 0 : index
    %c0_12 = arith.constant 0 : index
    %7 = vector.load %arg4[%c0_11, %c0_12] : memref<1x128xf32, #tpu.memory_space<vmem>>, vector<1x128xf32>
    %c0_13 = arith.constant 0 : index
    %c0_14 = arith.constant 0 : index
    %8 = vector.load %arg7[%c0_13, %c0_14] : memref<1x128xf32, #tpu.memory_space<vmem>>, vector<1x128xf32>
    %c0_15 = arith.constant 0 : index
    %c0_16 = arith.constant 0 : index
    %9 = vector.load %arg8[%c0_15, %c0_16] : memref<32x4xf32, #tpu.memory_space<vmem>>, vector<32x4xf32>
    %c0_17 = arith.constant 0 : index
    %c0_18 = arith.constant 0 : index
    %10 = vector.load %arg9[%c0_17, %c0_18] : memref<1x4xf32, #tpu.memory_space<vmem>>, vector<1x4xf32>
    %11 = vector.shape_cast %8 : vector<1x128xf32> to vector<1x128xf32>
    %12 = vector.broadcast %11 : vector<1x128xf32> to vector<2x128xf32>
    %cst_19 = arith.constant dense<0.000000e+00> : vector<16x128xf32>
    %13 = tpu.matmul %2, %3, %cst_19 {dimension_numbers = #tpu.dot_dimension_numbers<[1], [0], [0], [1], [0, 0, 1, 1], [], []>} : vector<16x4xf32>, vector<4x128xf32>, vector<16x128xf32> -> vector<16x128xf32>
    %14 = vector.broadcast %7 : vector<1x128xf32> to vector<16x128xf32>
    %15 = arith.addf %13, %14 : vector<16x128xf32>
    %cst_20 = arith.constant 0.000000e+00 : f32
    %16 = vector.broadcast %cst_20 : f32 to vector<2x32xf32>
    %cst_21 = arith.constant 0.000000e+00 : f32
    %17 = vector.broadcast %cst_21 : f32 to vector<2x32xf32>
    %cst_22 = arith.constant 0.000000e+00 : f32
    %18 = vector.broadcast %cst_22 : f32 to vector<2x32xf32>
    %cst_23 = arith.constant 0.000000e+00 : f32
    %19 = vector.broadcast %cst_23 : f32 to vector<2x32xf32>
    %20 = vector.extract_strided_slice %15 {offsets = [0, 0], sizes = [2, 128], strides = [1, 1]} : vector<16x128xf32> to vector<2x128xf32>
    %cst_24 = arith.constant dense<0.000000e+00> : vector<2x128xf32>
    %21 = tpu.matmul %16, %5, %cst_24 {dimension_numbers = #tpu.dot_dimension_numbers<[1], [0], [0], [1], [0, 0, 1, 1], [], []>} : vector<2x32xf32>, vector<32x128xf32>, vector<2x128xf32> -> vector<2x128xf32>
    %22 = arith.addf %20, %21 : vector<2x128xf32>
    %23 = arith.negf %22 : vector<2x128xf32>
    %24 = math.exp %23 : vector<2x128xf32>
    %cst_25 = arith.constant 1.000000e+00 : f32
    %25 = vector.broadcast %cst_25 : f32 to vector<2x128xf32>
    %26 = arith.addf %25, %24 : vector<2x128xf32>
    %27 = arith.divf %25, %26 : vector<2x128xf32>
    %28 = vector.extract_strided_slice %27 {offsets = [0, 0], sizes = [2, 32], strides = [1, 1]} : vector<2x128xf32> to vector<2x32xf32>
    %29 = vector.extract_strided_slice %27 {offsets = [0, 32], sizes = [2, 32], strides = [1, 1]} : vector<2x128xf32> to vector<2x32xf32>
    %30 = vector.extract_strided_slice %27 {offsets = [0, 96], sizes = [2, 32], strides = [1, 1]} : vector<2x128xf32> to vector<2x32xf32>
    %31 = vector.extract_strided_slice %22 {offsets = [0, 64], sizes = [2, 32], strides = [1, 1]} : vector<2x128xf32> to vector<2x32xf32>
    %32 = math.tanh %31 : vector<2x32xf32>
    %33 = arith.mulf %29, %18 : vector<2x32xf32>
    %34 = arith.mulf %28, %32 : vector<2x32xf32>
    %35 = arith.addf %33, %34 : vector<2x32xf32>
    %36 = math.tanh %35 : vector<2x32xf32>
    %37 = arith.mulf %30, %36 : vector<2x32xf32>
    %cst_26 = arith.constant dense<0.000000e+00> : vector<2x128xf32>
    %38 = tpu.matmul %37, %4, %cst_26 {dimension_numbers = #tpu.dot_dimension_numbers<[1], [0], [0], [1], [0, 0, 1, 1], [], []>} : vector<2x32xf32>, vector<32x128xf32>, vector<2x128xf32> -> vector<2x128xf32>
    %cst_27 = arith.constant dense<0.000000e+00> : vector<2x128xf32>
    %39 = tpu.matmul %17, %6, %cst_27 {dimension_numbers = #tpu.dot_dimension_numbers<[1], [0], [0], [1], [0, 0, 1, 1], [], []>} : vector<2x32xf32>, vector<32x128xf32>, vector<2x128xf32> -> vector<2x128xf32>
    %40 = arith.addf %38, %39 : vector<2x128xf32>
    %41 = arith.addf %40, %12 : vector<2x128xf32>
    %42 = arith.negf %41 : vector<2x128xf32>
    %43 = math.exp %42 : vector<2x128xf32>
    %cst_28 = arith.constant 1.000000e+00 : f32
    %44 = vector.broadcast %cst_28 : f32 to vector<2x128xf32>
    %45 = arith.addf %44, %43 : vector<2x128xf32>
    %46 = arith.divf %44, %45 : vector<2x128xf32>
    %47 = vector.extract_strided_slice %46 {offsets = [0, 0], sizes = [2, 32], strides = [1, 1]} : vector<2x128xf32> to vector<2x32xf32>
    %48 = vector.extract_strided_slice %46 {offsets = [0, 32], sizes = [2, 32], strides = [1, 1]} : vector<2x128xf32> to vector<2x32xf32>
    %49 = vector.extract_strided_slice %46 {offsets = [0, 96], sizes = [2, 32], strides = [1, 1]} : vector<2x128xf32> to vector<2x32xf32>
    %50 = vector.extract_strided_slice %41 {offsets = [0, 64], sizes = [2, 32], strides = [1, 1]} : vector<2x128xf32> to vector<2x32xf32>
    %51 = math.tanh %50 : vector<2x32xf32>
    %52 = arith.mulf %48, %19 : vector<2x32xf32>
    %53 = arith.mulf %47, %51 : vector<2x32xf32>
    %54 = arith.addf %52, %53 : vector<2x32xf32>
    %55 = math.tanh %54 : vector<2x32xf32>
    %56 = arith.mulf %49, %55 : vector<2x32xf32>
    %57 = vector.extract_strided_slice %15 {offsets = [2, 0], sizes = [2, 128], strides = [1, 1]} : vector<16x128xf32> to vector<2x128xf32>
    %cst_29 = arith.constant dense<0.000000e+00> : vector<2x128xf32>
    %58 = tpu.matmul %37, %5, %cst_29 {dimension_numbers = #tpu.dot_dimension_numbers<[1], [0], [0], [1], [0, 0, 1, 1], [], []>} : vector<2x32xf32>, vector<32x128xf32>, vector<2x128xf32> -> vector<2x128xf32>
    %59 = arith.addf %57, %58 : vector<2x128xf32>
    %60 = arith.negf %59 : vector<2x128xf32>
    %61 = math.exp %60 : vector<2x128xf32>
    %cst_30 = arith.constant 1.000000e+00 : f32
    %62 = vector.broadcast %cst_30 : f32 to vector<2x128xf32>
    %63 = arith.addf %62, %61 : vector<2x128xf32>
    %64 = arith.divf %62, %63 : vector<2x128xf32>
    %65 = vector.extract_strided_slice %64 {offsets = [0, 0], sizes = [2, 32], strides = [1, 1]} : vector<2x128xf32> to vector<2x32xf32>
    %66 = vector.extract_strided_slice %64 {offsets = [0, 32], sizes = [2, 32], strides = [1, 1]} : vector<2x128xf32> to vector<2x32xf32>
    %67 = vector.extract_strided_slice %64 {offsets = [0, 96], sizes = [2, 32], strides = [1, 1]} : vector<2x128xf32> to vector<2x32xf32>
    %68 = vector.extract_strided_slice %59 {offsets = [0, 64], sizes = [2, 32], strides = [1, 1]} : vector<2x128xf32> to vector<2x32xf32>
    %69 = math.tanh %68 : vector<2x32xf32>
    %70 = arith.mulf %66, %35 : vector<2x32xf32>
    %71 = arith.mulf %65, %69 : vector<2x32xf32>
    %72 = arith.addf %70, %71 : vector<2x32xf32>
    %73 = math.tanh %72 : vector<2x32xf32>
    %74 = arith.mulf %67, %73 : vector<2x32xf32>
    %cst_31 = arith.constant dense<0.000000e+00> : vector<2x128xf32>
    %75 = tpu.matmul %74, %4, %cst_31 {dimension_numbers = #tpu.dot_dimension_numbers<[1], [0], [0], [1], [0, 0, 1, 1], [], []>} : vector<2x32xf32>, vector<32x128xf32>, vector<2x128xf32> -> vector<2x128xf32>
    %cst_32 = arith.constant dense<0.000000e+00> : vector<2x128xf32>
    %76 = tpu.matmul %56, %6, %cst_32 {dimension_numbers = #tpu.dot_dimension_numbers<[1], [0], [0], [1], [0, 0, 1, 1], [], []>} : vector<2x32xf32>, vector<32x128xf32>, vector<2x128xf32> -> vector<2x128xf32>
    %77 = arith.addf %75, %76 : vector<2x128xf32>
    %78 = arith.addf %77, %12 : vector<2x128xf32>
    %79 = arith.negf %78 : vector<2x128xf32>
    %80 = math.exp %79 : vector<2x128xf32>
    %cst_33 = arith.constant 1.000000e+00 : f32
    %81 = vector.broadcast %cst_33 : f32 to vector<2x128xf32>
    %82 = arith.addf %81, %80 : vector<2x128xf32>
    %83 = arith.divf %81, %82 : vector<2x128xf32>
    %84 = vector.extract_strided_slice %83 {offsets = [0, 0], sizes = [2, 32], strides = [1, 1]} : vector<2x128xf32> to vector<2x32xf32>
    %85 = vector.extract_strided_slice %83 {offsets = [0, 32], sizes = [2, 32], strides = [1, 1]} : vector<2x128xf32> to vector<2x32xf32>
    %86 = vector.extract_strided_slice %83 {offsets = [0, 96], sizes = [2, 32], strides = [1, 1]} : vector<2x128xf32> to vector<2x32xf32>
    %87 = vector.extract_strided_slice %78 {offsets = [0, 64], sizes = [2, 32], strides = [1, 1]} : vector<2x128xf32> to vector<2x32xf32>
    %88 = math.tanh %87 : vector<2x32xf32>
    %89 = arith.mulf %85, %54 : vector<2x32xf32>
    %90 = arith.mulf %84, %88 : vector<2x32xf32>
    %91 = arith.addf %89, %90 : vector<2x32xf32>
    %92 = math.tanh %91 : vector<2x32xf32>
    %93 = arith.mulf %86, %92 : vector<2x32xf32>
    %94 = vector.extract_strided_slice %15 {offsets = [4, 0], sizes = [2, 128], strides = [1, 1]} : vector<16x128xf32> to vector<2x128xf32>
    %cst_34 = arith.constant dense<0.000000e+00> : vector<2x128xf32>
    %95 = tpu.matmul %74, %5, %cst_34 {dimension_numbers = #tpu.dot_dimension_numbers<[1], [0], [0], [1], [0, 0, 1, 1], [], []>} : vector<2x32xf32>, vector<32x128xf32>, vector<2x128xf32> -> vector<2x128xf32>
    %96 = arith.addf %94, %95 : vector<2x128xf32>
    %97 = arith.negf %96 : vector<2x128xf32>
    %98 = math.exp %97 : vector<2x128xf32>
    %cst_35 = arith.constant 1.000000e+00 : f32
    %99 = vector.broadcast %cst_35 : f32 to vector<2x128xf32>
    %100 = arith.addf %99, %98 : vector<2x128xf32>
    %101 = arith.divf %99, %100 : vector<2x128xf32>
    %102 = vector.extract_strided_slice %101 {offsets = [0, 0], sizes = [2, 32], strides = [1, 1]} : vector<2x128xf32> to vector<2x32xf32>
    %103 = vector.extract_strided_slice %101 {offsets = [0, 32], sizes = [2, 32], strides = [1, 1]} : vector<2x128xf32> to vector<2x32xf32>
    %104 = vector.extract_strided_slice %101 {offsets = [0, 96], sizes = [2, 32], strides = [1, 1]} : vector<2x128xf32> to vector<2x32xf32>
    %105 = vector.extract_strided_slice %96 {offsets = [0, 64], sizes = [2, 32], strides = [1, 1]} : vector<2x128xf32> to vector<2x32xf32>
    %106 = math.tanh %105 : vector<2x32xf32>
    %107 = arith.mulf %103, %72 : vector<2x32xf32>
    %108 = arith.mulf %102, %106 : vector<2x32xf32>
    %109 = arith.addf %107, %108 : vector<2x32xf32>
    %110 = math.tanh %109 : vector<2x32xf32>
    %111 = arith.mulf %104, %110 : vector<2x32xf32>
    %cst_36 = arith.constant dense<0.000000e+00> : vector<2x128xf32>
    %112 = tpu.matmul %111, %4, %cst_36 {dimension_numbers = #tpu.dot_dimension_numbers<[1], [0], [0], [1], [0, 0, 1, 1], [], []>} : vector<2x32xf32>, vector<32x128xf32>, vector<2x128xf32> -> vector<2x128xf32>
    %cst_37 = arith.constant dense<0.000000e+00> : vector<2x128xf32>
    %113 = tpu.matmul %93, %6, %cst_37 {dimension_numbers = #tpu.dot_dimension_numbers<[1], [0], [0], [1], [0, 0, 1, 1], [], []>} : vector<2x32xf32>, vector<32x128xf32>, vector<2x128xf32> -> vector<2x128xf32>
    %114 = arith.addf %112, %113 : vector<2x128xf32>
    %115 = arith.addf %114, %12 : vector<2x128xf32>
    %116 = arith.negf %115 : vector<2x128xf32>
    %117 = math.exp %116 : vector<2x128xf32>
    %cst_38 = arith.constant 1.000000e+00 : f32
    %118 = vector.broadcast %cst_38 : f32 to vector<2x128xf32>
    %119 = arith.addf %118, %117 : vector<2x128xf32>
    %120 = arith.divf %118, %119 : vector<2x128xf32>
    %121 = vector.extract_strided_slice %120 {offsets = [0, 0], sizes = [2, 32], strides = [1, 1]} : vector<2x128xf32> to vector<2x32xf32>
    %122 = vector.extract_strided_slice %120 {offsets = [0, 32], sizes = [2, 32], strides = [1, 1]} : vector<2x128xf32> to vector<2x32xf32>
    %123 = vector.extract_strided_slice %120 {offsets = [0, 96], sizes = [2, 32], strides = [1, 1]} : vector<2x128xf32> to vector<2x32xf32>
    %124 = vector.extract_strided_slice %115 {offsets = [0, 64], sizes = [2, 32], strides = [1, 1]} : vector<2x128xf32> to vector<2x32xf32>
    %125 = math.tanh %124 : vector<2x32xf32>
    %126 = arith.mulf %122, %91 : vector<2x32xf32>
    %127 = arith.mulf %121, %125 : vector<2x32xf32>
    %128 = arith.addf %126, %127 : vector<2x32xf32>
    %129 = math.tanh %128 : vector<2x32xf32>
    %130 = arith.mulf %123, %129 : vector<2x32xf32>
    %131 = vector.extract_strided_slice %15 {offsets = [6, 0], sizes = [2, 128], strides = [1, 1]} : vector<16x128xf32> to vector<2x128xf32>
    %cst_39 = arith.constant dense<0.000000e+00> : vector<2x128xf32>
    %132 = tpu.matmul %111, %5, %cst_39 {dimension_numbers = #tpu.dot_dimension_numbers<[1], [0], [0], [1], [0, 0, 1, 1], [], []>} : vector<2x32xf32>, vector<32x128xf32>, vector<2x128xf32> -> vector<2x128xf32>
    %133 = arith.addf %131, %132 : vector<2x128xf32>
    %134 = arith.negf %133 : vector<2x128xf32>
    %135 = math.exp %134 : vector<2x128xf32>
    %cst_40 = arith.constant 1.000000e+00 : f32
    %136 = vector.broadcast %cst_40 : f32 to vector<2x128xf32>
    %137 = arith.addf %136, %135 : vector<2x128xf32>
    %138 = arith.divf %136, %137 : vector<2x128xf32>
    %139 = vector.extract_strided_slice %138 {offsets = [0, 0], sizes = [2, 32], strides = [1, 1]} : vector<2x128xf32> to vector<2x32xf32>
    %140 = vector.extract_strided_slice %138 {offsets = [0, 32], sizes = [2, 32], strides = [1, 1]} : vector<2x128xf32> to vector<2x32xf32>
    %141 = vector.extract_strided_slice %138 {offsets = [0, 96], sizes = [2, 32], strides = [1, 1]} : vector<2x128xf32> to vector<2x32xf32>
    %142 = vector.extract_strided_slice %133 {offsets = [0, 64], sizes = [2, 32], strides = [1, 1]} : vector<2x128xf32> to vector<2x32xf32>
    %143 = math.tanh %142 : vector<2x32xf32>
    %144 = arith.mulf %140, %109 : vector<2x32xf32>
    %145 = arith.mulf %139, %143 : vector<2x32xf32>
    %146 = arith.addf %144, %145 : vector<2x32xf32>
    %147 = math.tanh %146 : vector<2x32xf32>
    %148 = arith.mulf %141, %147 : vector<2x32xf32>
    %cst_41 = arith.constant dense<0.000000e+00> : vector<2x128xf32>
    %149 = tpu.matmul %148, %4, %cst_41 {dimension_numbers = #tpu.dot_dimension_numbers<[1], [0], [0], [1], [0, 0, 1, 1], [], []>} : vector<2x32xf32>, vector<32x128xf32>, vector<2x128xf32> -> vector<2x128xf32>
    %cst_42 = arith.constant dense<0.000000e+00> : vector<2x128xf32>
    %150 = tpu.matmul %130, %6, %cst_42 {dimension_numbers = #tpu.dot_dimension_numbers<[1], [0], [0], [1], [0, 0, 1, 1], [], []>} : vector<2x32xf32>, vector<32x128xf32>, vector<2x128xf32> -> vector<2x128xf32>
    %151 = arith.addf %149, %150 : vector<2x128xf32>
    %152 = arith.addf %151, %12 : vector<2x128xf32>
    %153 = arith.negf %152 : vector<2x128xf32>
    %154 = math.exp %153 : vector<2x128xf32>
    %cst_43 = arith.constant 1.000000e+00 : f32
    %155 = vector.broadcast %cst_43 : f32 to vector<2x128xf32>
    %156 = arith.addf %155, %154 : vector<2x128xf32>
    %157 = arith.divf %155, %156 : vector<2x128xf32>
    %158 = vector.extract_strided_slice %157 {offsets = [0, 0], sizes = [2, 32], strides = [1, 1]} : vector<2x128xf32> to vector<2x32xf32>
    %159 = vector.extract_strided_slice %157 {offsets = [0, 32], sizes = [2, 32], strides = [1, 1]} : vector<2x128xf32> to vector<2x32xf32>
    %160 = vector.extract_strided_slice %157 {offsets = [0, 96], sizes = [2, 32], strides = [1, 1]} : vector<2x128xf32> to vector<2x32xf32>
    %161 = vector.extract_strided_slice %152 {offsets = [0, 64], sizes = [2, 32], strides = [1, 1]} : vector<2x128xf32> to vector<2x32xf32>
    %162 = math.tanh %161 : vector<2x32xf32>
    %163 = arith.mulf %159, %128 : vector<2x32xf32>
    %164 = arith.mulf %158, %162 : vector<2x32xf32>
    %165 = arith.addf %163, %164 : vector<2x32xf32>
    %166 = math.tanh %165 : vector<2x32xf32>
    %167 = arith.mulf %160, %166 : vector<2x32xf32>
    %168 = vector.extract_strided_slice %15 {offsets = [8, 0], sizes = [2, 128], strides = [1, 1]} : vector<16x128xf32> to vector<2x128xf32>
    %cst_44 = arith.constant dense<0.000000e+00> : vector<2x128xf32>
    %169 = tpu.matmul %148, %5, %cst_44 {dimension_numbers = #tpu.dot_dimension_numbers<[1], [0], [0], [1], [0, 0, 1, 1], [], []>} : vector<2x32xf32>, vector<32x128xf32>, vector<2x128xf32> -> vector<2x128xf32>
    %170 = arith.addf %168, %169 : vector<2x128xf32>
    %171 = arith.negf %170 : vector<2x128xf32>
    %172 = math.exp %171 : vector<2x128xf32>
    %cst_45 = arith.constant 1.000000e+00 : f32
    %173 = vector.broadcast %cst_45 : f32 to vector<2x128xf32>
    %174 = arith.addf %173, %172 : vector<2x128xf32>
    %175 = arith.divf %173, %174 : vector<2x128xf32>
    %176 = vector.extract_strided_slice %175 {offsets = [0, 0], sizes = [2, 32], strides = [1, 1]} : vector<2x128xf32> to vector<2x32xf32>
    %177 = vector.extract_strided_slice %175 {offsets = [0, 32], sizes = [2, 32], strides = [1, 1]} : vector<2x128xf32> to vector<2x32xf32>
    %178 = vector.extract_strided_slice %175 {offsets = [0, 96], sizes = [2, 32], strides = [1, 1]} : vector<2x128xf32> to vector<2x32xf32>
    %179 = vector.extract_strided_slice %170 {offsets = [0, 64], sizes = [2, 32], strides = [1, 1]} : vector<2x128xf32> to vector<2x32xf32>
    %180 = math.tanh %179 : vector<2x32xf32>
    %181 = arith.mulf %177, %146 : vector<2x32xf32>
    %182 = arith.mulf %176, %180 : vector<2x32xf32>
    %183 = arith.addf %181, %182 : vector<2x32xf32>
    %184 = math.tanh %183 : vector<2x32xf32>
    %185 = arith.mulf %178, %184 : vector<2x32xf32>
    %cst_46 = arith.constant dense<0.000000e+00> : vector<2x128xf32>
    %186 = tpu.matmul %185, %4, %cst_46 {dimension_numbers = #tpu.dot_dimension_numbers<[1], [0], [0], [1], [0, 0, 1, 1], [], []>} : vector<2x32xf32>, vector<32x128xf32>, vector<2x128xf32> -> vector<2x128xf32>
    %cst_47 = arith.constant dense<0.000000e+00> : vector<2x128xf32>
    %187 = tpu.matmul %167, %6, %cst_47 {dimension_numbers = #tpu.dot_dimension_numbers<[1], [0], [0], [1], [0, 0, 1, 1], [], []>} : vector<2x32xf32>, vector<32x128xf32>, vector<2x128xf32> -> vector<2x128xf32>
    %188 = arith.addf %186, %187 : vector<2x128xf32>
    %189 = arith.addf %188, %12 : vector<2x128xf32>
    %190 = arith.negf %189 : vector<2x128xf32>
    %191 = math.exp %190 : vector<2x128xf32>
    %cst_48 = arith.constant 1.000000e+00 : f32
    %192 = vector.broadcast %cst_48 : f32 to vector<2x128xf32>
    %193 = arith.addf %192, %191 : vector<2x128xf32>
    %194 = arith.divf %192, %193 : vector<2x128xf32>
    %195 = vector.extract_strided_slice %194 {offsets = [0, 0], sizes = [2, 32], strides = [1, 1]} : vector<2x128xf32> to vector<2x32xf32>
    %196 = vector.extract_strided_slice %194 {offsets = [0, 32], sizes = [2, 32], strides = [1, 1]} : vector<2x128xf32> to vector<2x32xf32>
    %197 = vector.extract_strided_slice %194 {offsets = [0, 96], sizes = [2, 32], strides = [1, 1]} : vector<2x128xf32> to vector<2x32xf32>
    %198 = vector.extract_strided_slice %189 {offsets = [0, 64], sizes = [2, 32], strides = [1, 1]} : vector<2x128xf32> to vector<2x32xf32>
    %199 = math.tanh %198 : vector<2x32xf32>
    %200 = arith.mulf %196, %165 : vector<2x32xf32>
    %201 = arith.mulf %195, %199 : vector<2x32xf32>
    %202 = arith.addf %200, %201 : vector<2x32xf32>
    %203 = math.tanh %202 : vector<2x32xf32>
    %204 = arith.mulf %197, %203 : vector<2x32xf32>
    %cst_49 = arith.constant dense<0.000000e+00> : vector<2x4xf32>
    %205 = tpu.matmul %204, %9, %cst_49 {dimension_numbers = #tpu.dot_dimension_numbers<[1], [0], [0], [1], [0, 0, 1, 1], [], []>} : vector<2x32xf32>, vector<32x4xf32>, vector<2x4xf32> -> vector<2x4xf32>
    %206 = vector.broadcast %10 : vector<1x4xf32> to vector<2x4xf32>
    %207 = arith.addf %205, %206 : vector<2x4xf32>
    %c0_50 = arith.constant 0 : index
    %c0_51 = arith.constant 0 : index
    %208 = vector.load %arg10[%c0_50, %c0_51] : memref<2x16xf32, #tpu.memory_space<vmem>>, vector<2x4xf32>
    tpu.vector_store %arg10[%c0_50, %c0_51], %207 {strides = array<i32>} : memref<2x16xf32, #tpu.memory_space<vmem>>, vector<2x4xf32>,
    %209 = vector.extract_strided_slice %15 {offsets = [10, 0], sizes = [2, 128], strides = [1, 1]} : vector<16x128xf32> to vector<2x128xf32>
    %cst_52 = arith.constant dense<0.000000e+00> : vector<2x128xf32>
    %210 = tpu.matmul %185, %5, %cst_52 {dimension_numbers = #tpu.dot_dimension_numbers<[1], [0], [0], [1], [0, 0, 1, 1], [], []>} : vector<2x32xf32>, vector<32x128xf32>, vector<2x128xf32> -> vector<2x128xf32>
    %211 = arith.addf %209, %210 : vector<2x128xf32>
    %212 = arith.negf %211 : vector<2x128xf32>
    %213 = math.exp %212 : vector<2x128xf32>
    %cst_53 = arith.constant 1.000000e+00 : f32
    %214 = vector.broadcast %cst_53 : f32 to vector<2x128xf32>
    %215 = arith.addf %214, %213 : vector<2x128xf32>
    %216 = arith.divf %214, %215 : vector<2x128xf32>
    %217 = vector.extract_strided_slice %216 {offsets = [0, 0], sizes = [2, 32], strides = [1, 1]} : vector<2x128xf32> to vector<2x32xf32>
    %218 = vector.extract_strided_slice %216 {offsets = [0, 32], sizes = [2, 32], strides = [1, 1]} : vector<2x128xf32> to vector<2x32xf32>
    %219 = vector.extract_strided_slice %216 {offsets = [0, 96], sizes = [2, 32], strides = [1, 1]} : vector<2x128xf32> to vector<2x32xf32>
    %220 = vector.extract_strided_slice %211 {offsets = [0, 64], sizes = [2, 32], strides = [1, 1]} : vector<2x128xf32> to vector<2x32xf32>
    %221 = math.tanh %220 : vector<2x32xf32>
    %222 = arith.mulf %218, %183 : vector<2x32xf32>
    %223 = arith.mulf %217, %221 : vector<2x32xf32>
    %224 = arith.addf %222, %223 : vector<2x32xf32>
    %225 = math.tanh %224 : vector<2x32xf32>
    %226 = arith.mulf %219, %225 : vector<2x32xf32>
    %cst_54 = arith.constant dense<0.000000e+00> : vector<2x128xf32>
    %227 = tpu.matmul %226, %4, %cst_54 {dimension_numbers = #tpu.dot_dimension_numbers<[1], [0], [0], [1], [0, 0, 1, 1], [], []>} : vector<2x32xf32>, vector<32x128xf32>, vector<2x128xf32> -> vector<2x128xf32>
    %cst_55 = arith.constant dense<0.000000e+00> : vector<2x128xf32>
    %228 = tpu.matmul %204, %6, %cst_55 {dimension_numbers = #tpu.dot_dimension_numbers<[1], [0], [0], [1], [0, 0, 1, 1], [], []>} : vector<2x32xf32>, vector<32x128xf32>, vector<2x128xf32> -> vector<2x128xf32>
    %229 = arith.addf %227, %228 : vector<2x128xf32>
    %230 = arith.addf %229, %12 : vector<2x128xf32>
    %231 = arith.negf %230 : vector<2x128xf32>
    %232 = math.exp %231 : vector<2x128xf32>
    %cst_56 = arith.constant 1.000000e+00 : f32
    %233 = vector.broadcast %cst_56 : f32 to vector<2x128xf32>
    %234 = arith.addf %233, %232 : vector<2x128xf32>
    %235 = arith.divf %233, %234 : vector<2x128xf32>
    %236 = vector.extract_strided_slice %235 {offsets = [0, 0], sizes = [2, 32], strides = [1, 1]} : vector<2x128xf32> to vector<2x32xf32>
    %237 = vector.extract_strided_slice %235 {offsets = [0, 32], sizes = [2, 32], strides = [1, 1]} : vector<2x128xf32> to vector<2x32xf32>
    %238 = vector.extract_strided_slice %235 {offsets = [0, 96], sizes = [2, 32], strides = [1, 1]} : vector<2x128xf32> to vector<2x32xf32>
    %239 = vector.extract_strided_slice %230 {offsets = [0, 64], sizes = [2, 32], strides = [1, 1]} : vector<2x128xf32> to vector<2x32xf32>
    %240 = math.tanh %239 : vector<2x32xf32>
    %241 = arith.mulf %237, %202 : vector<2x32xf32>
    %242 = arith.mulf %236, %240 : vector<2x32xf32>
    %243 = arith.addf %241, %242 : vector<2x32xf32>
    %244 = math.tanh %243 : vector<2x32xf32>
    %245 = arith.mulf %238, %244 : vector<2x32xf32>
    %cst_57 = arith.constant dense<0.000000e+00> : vector<2x4xf32>
    %246 = tpu.matmul %245, %9, %cst_57 {dimension_numbers = #tpu.dot_dimension_numbers<[1], [0], [0], [1], [0, 0, 1, 1], [], []>} : vector<2x32xf32>, vector<32x4xf32>, vector<2x4xf32> -> vector<2x4xf32>
    %247 = vector.broadcast %10 : vector<1x4xf32> to vector<2x4xf32>
    %248 = arith.addf %246, %247 : vector<2x4xf32>
    %c0_58 = arith.constant 0 : index
    %c4 = arith.constant 4 : index
    %249 = vector.load %arg10[%c0_58, %c4] : memref<2x16xf32, #tpu.memory_space<vmem>>, vector<2x4xf32>
    tpu.vector_store %arg10[%c0_58, %c4], %248 {strides = array<i32>} : memref<2x16xf32, #tpu.memory_space<vmem>>, vector<2x4xf32>,
    %250 = vector.extract_strided_slice %15 {offsets = [12, 0], sizes = [2, 128], strides = [1, 1]} : vector<16x128xf32> to vector<2x128xf32>
    %cst_59 = arith.constant dense<0.000000e+00> : vector<2x128xf32>
    %251 = tpu.matmul %226, %5, %cst_59 {dimension_numbers = #tpu.dot_dimension_numbers<[1], [0], [0], [1], [0, 0, 1, 1], [], []>} : vector<2x32xf32>, vector<32x128xf32>, vector<2x128xf32> -> vector<2x128xf32>
    %252 = arith.addf %250, %251 : vector<2x128xf32>
    %253 = arith.negf %252 : vector<2x128xf32>
    %254 = math.exp %253 : vector<2x128xf32>
    %cst_60 = arith.constant 1.000000e+00 : f32
    %255 = vector.broadcast %cst_60 : f32 to vector<2x128xf32>
    %256 = arith.addf %255, %254 : vector<2x128xf32>
    %257 = arith.divf %255, %256 : vector<2x128xf32>
    %258 = vector.extract_strided_slice %257 {offsets = [0, 0], sizes = [2, 32], strides = [1, 1]} : vector<2x128xf32> to vector<2x32xf32>
    %259 = vector.extract_strided_slice %257 {offsets = [0, 32], sizes = [2, 32], strides = [1, 1]} : vector<2x128xf32> to vector<2x32xf32>
    %260 = vector.extract_strided_slice %257 {offsets = [0, 96], sizes = [2, 32], strides = [1, 1]} : vector<2x128xf32> to vector<2x32xf32>
    %261 = vector.extract_strided_slice %252 {offsets = [0, 64], sizes = [2, 32], strides = [1, 1]} : vector<2x128xf32> to vector<2x32xf32>
    %262 = math.tanh %261 : vector<2x32xf32>
    %263 = arith.mulf %259, %224 : vector<2x32xf32>
    %264 = arith.mulf %258, %262 : vector<2x32xf32>
    %265 = arith.addf %263, %264 : vector<2x32xf32>
    %266 = math.tanh %265 : vector<2x32xf32>
    %267 = arith.mulf %260, %266 : vector<2x32xf32>
    %cst_61 = arith.constant dense<0.000000e+00> : vector<2x128xf32>
    %268 = tpu.matmul %267, %4, %cst_61 {dimension_numbers = #tpu.dot_dimension_numbers<[1], [0], [0], [1], [0, 0, 1, 1], [], []>} : vector<2x32xf32>, vector<32x128xf32>, vector<2x128xf32> -> vector<2x128xf32>
    %cst_62 = arith.constant dense<0.000000e+00> : vector<2x128xf32>
    %269 = tpu.matmul %245, %6, %cst_62 {dimension_numbers = #tpu.dot_dimension_numbers<[1], [0], [0], [1], [0, 0, 1, 1], [], []>} : vector<2x32xf32>, vector<32x128xf32>, vector<2x128xf32> -> vector<2x128xf32>
    %270 = arith.addf %268, %269 : vector<2x128xf32>
    %271 = arith.addf %270, %12 : vector<2x128xf32>
    %272 = arith.negf %271 : vector<2x128xf32>
    %273 = math.exp %272 : vector<2x128xf32>
    %cst_63 = arith.constant 1.000000e+00 : f32
    %274 = vector.broadcast %cst_63 : f32 to vector<2x128xf32>
    %275 = arith.addf %274, %273 : vector<2x128xf32>
    %276 = arith.divf %274, %275 : vector<2x128xf32>
    %277 = vector.extract_strided_slice %276 {offsets = [0, 0], sizes = [2, 32], strides = [1, 1]} : vector<2x128xf32> to vector<2x32xf32>
    %278 = vector.extract_strided_slice %276 {offsets = [0, 32], sizes = [2, 32], strides = [1, 1]} : vector<2x128xf32> to vector<2x32xf32>
    %279 = vector.extract_strided_slice %276 {offsets = [0, 96], sizes = [2, 32], strides = [1, 1]} : vector<2x128xf32> to vector<2x32xf32>
    %280 = vector.extract_strided_slice %271 {offsets = [0, 64], sizes = [2, 32], strides = [1, 1]} : vector<2x128xf32> to vector<2x32xf32>
    %281 = math.tanh %280 : vector<2x32xf32>
    %282 = arith.mulf %278, %243 : vector<2x32xf32>
    %283 = arith.mulf %277, %281 : vector<2x32xf32>
    %284 = arith.addf %282, %283 : vector<2x32xf32>
    %285 = math.tanh %284 : vector<2x32xf32>
    %286 = arith.mulf %279, %285 : vector<2x32xf32>
    %cst_64 = arith.constant dense<0.000000e+00> : vector<2x4xf32>
    %287 = tpu.matmul %286, %9, %cst_64 {dimension_numbers = #tpu.dot_dimension_numbers<[1], [0], [0], [1], [0, 0, 1, 1], [], []>} : vector<2x32xf32>, vector<32x4xf32>, vector<2x4xf32> -> vector<2x4xf32>
    %288 = vector.broadcast %10 : vector<1x4xf32> to vector<2x4xf32>
    %289 = arith.addf %287, %288 : vector<2x4xf32>
    %c0_65 = arith.constant 0 : index
    %c8 = arith.constant 8 : index
    %290 = vector.load %arg10[%c0_65, %c8] : memref<2x16xf32, #tpu.memory_space<vmem>>, vector<2x4xf32>
    tpu.vector_store %arg10[%c0_65, %c8], %289 {strides = array<i32>} : memref<2x16xf32, #tpu.memory_space<vmem>>, vector<2x4xf32>,
    %291 = vector.extract_strided_slice %15 {offsets = [14, 0], sizes = [2, 128], strides = [1, 1]} : vector<16x128xf32> to vector<2x128xf32>
    %cst_66 = arith.constant dense<0.000000e+00> : vector<2x128xf32>
    %292 = tpu.matmul %267, %5, %cst_66 {dimension_numbers = #tpu.dot_dimension_numbers<[1], [0], [0], [1], [0, 0, 1, 1], [], []>} : vector<2x32xf32>, vector<32x128xf32>, vector<2x128xf32> -> vector<2x128xf32>
    %293 = arith.addf %291, %292 : vector<2x128xf32>
    %294 = arith.negf %293 : vector<2x128xf32>
    %295 = math.exp %294 : vector<2x128xf32>
    %cst_67 = arith.constant 1.000000e+00 : f32
    %296 = vector.broadcast %cst_67 : f32 to vector<2x128xf32>
    %297 = arith.addf %296, %295 : vector<2x128xf32>
    %298 = arith.divf %296, %297 : vector<2x128xf32>
    %299 = vector.extract_strided_slice %298 {offsets = [0, 0], sizes = [2, 32], strides = [1, 1]} : vector<2x128xf32> to vector<2x32xf32>
    %300 = vector.extract_strided_slice %298 {offsets = [0, 32], sizes = [2, 32], strides = [1, 1]} : vector<2x128xf32> to vector<2x32xf32>
    %301 = vector.extract_strided_slice %298 {offsets = [0, 96], sizes = [2, 32], strides = [1, 1]} : vector<2x128xf32> to vector<2x32xf32>
    %302 = vector.extract_strided_slice %293 {offsets = [0, 64], sizes = [2, 32], strides = [1, 1]} : vector<2x128xf32> to vector<2x32xf32>
    %303 = math.tanh %302 : vector<2x32xf32>
    %304 = arith.mulf %300, %265 : vector<2x32xf32>
    %305 = arith.mulf %299, %303 : vector<2x32xf32>
    %306 = arith.addf %304, %305 : vector<2x32xf32>
    %307 = math.tanh %306 : vector<2x32xf32>
    %308 = arith.mulf %301, %307 : vector<2x32xf32>
    %cst_68 = arith.constant dense<0.000000e+00> : vector<2x128xf32>
    %309 = tpu.matmul %308, %4, %cst_68 {dimension_numbers = #tpu.dot_dimension_numbers<[1], [0], [0], [1], [0, 0, 1, 1], [], []>} : vector<2x32xf32>, vector<32x128xf32>, vector<2x128xf32> -> vector<2x128xf32>
    %cst_69 = arith.constant dense<0.000000e+00> : vector<2x128xf32>
    %310 = tpu.matmul %286, %6, %cst_69 {dimension_numbers = #tpu.dot_dimension_numbers<[1], [0], [0], [1], [0, 0, 1, 1], [], []>} : vector<2x32xf32>, vector<32x128xf32>, vector<2x128xf32> -> vector<2x128xf32>
    %311 = arith.addf %309, %310 : vector<2x128xf32>
    %312 = arith.addf %311, %12 : vector<2x128xf32>
    %313 = arith.negf %312 : vector<2x128xf32>
    %314 = math.exp %313 : vector<2x128xf32>
    %cst_70 = arith.constant 1.000000e+00 : f32
    %315 = vector.broadcast %cst_70 : f32 to vector<2x128xf32>
    %316 = arith.addf %315, %314 : vector<2x128xf32>
    %317 = arith.divf %315, %316 : vector<2x128xf32>
    %318 = vector.extract_strided_slice %317 {offsets = [0, 0], sizes = [2, 32], strides = [1, 1]} : vector<2x128xf32> to vector<2x32xf32>
    %319 = vector.extract_strided_slice %317 {offsets = [0, 32], sizes = [2, 32], strides = [1, 1]} : vector<2x128xf32> to vector<2x32xf32>
    %320 = vector.extract_strided_slice %317 {offsets = [0, 96], sizes = [2, 32], strides = [1, 1]} : vector<2x128xf32> to vector<2x32xf32>
    %321 = vector.extract_strided_slice %312 {offsets = [0, 64], sizes = [2, 32], strides = [1, 1]} : vector<2x128xf32> to vector<2x32xf32>
    %322 = math.tanh %321 : vector<2x32xf32>
    %323 = arith.mulf %319, %284 : vector<2x32xf32>
    %324 = arith.mulf %318, %322 : vector<2x32xf32>
    %325 = arith.addf %323, %324 : vector<2x32xf32>
    %326 = math.tanh %325 : vector<2x32xf32>
    %327 = arith.mulf %320, %326 : vector<2x32xf32>
    %cst_71 = arith.constant dense<0.000000e+00> : vector<2x4xf32>
    %328 = tpu.matmul %327, %9, %cst_71 {dimension_numbers = #tpu.dot_dimension_numbers<[1], [0], [0], [1], [0, 0, 1, 1], [], []>} : vector<2x32xf32>, vector<32x4xf32>, vector<2x4xf32> -> vector<2x4xf32>
    %329 = vector.broadcast %10 : vector<1x4xf32> to vector<2x4xf32>
    %330 = arith.addf %328, %329 : vector<2x4xf32>
    %c0_72 = arith.constant 0 : index
    %c12 = arith.constant 12 : index
    %331 = vector.load %arg10[%c0_72, %c12] : memref<2x16xf32, #tpu.memory_space<vmem>>, vector<2x4xf32>
    tpu.vector_store %arg10[%c0_72, %c12], %330 {strides = array<i32>} : memref<2x16xf32, #tpu.memory_space<vmem>>, vector<2x4xf32>,
    return
  }
}

</mosaic_0001>

<bundles_post_ra>
// kernel: lstm_model_forward.1
= control target key start
LH: loop header
LB: loop body
LE: loop exit
PB: predicated region body
PF: predicated region fallthrough
CT: control target
= control target key end

     0   :  { %15 = vsyncpa [#allocation3], 0  ;;  %s4229_s0 = inlined_call_operand.vmem [shape: f32[16,4], index: 0, kind: input, shape index: {}]   ;;  %s4230_s1 = inlined_call_operand.vmem [shape: f32[16,16], index: 1, kind: input, shape index: {}]   ;;  %s4231_s2 = inlined_call_operand.hbm [shape: f32[4,128], index: 2, kind: input, shape index: {}]   ;;  %s4232_s3 = inlined_call_operand.vmem [shape: f32[32,128], index: 3, kind: input, shape index: {}]   ;;  %s4233_s4 = inlined_call_operand.vmem [shape: f32[1,128], index: 4, kind: input, shape index: {}]   ;;  %s4234_s5 = inlined_call_operand.vmem [shape: f32[32,128], index: 5, kind: input, shape index: {}]   ;;  %s4235_s6 = inlined_call_operand.hbm [shape: f32[32,128], index: 6, kind: input, shape index: {}]   ;;  %s4236_s7 = inlined_call_operand.vmem [shape: f32[1,128], index: 7, kind: input, shape index: {}]   ;;  %s4237_s8 = inlined_call_operand.vmem [shape: f32[32,4], index: 8, kind: input, shape index: {}]   ;;  %s4238_s9 = inlined_call_operand.hbm [shape: f32[1,4], index: 9, kind: input, shape index: {}]   ;;  %s4239_s10 = inlined_call_operand.vmem [shape: f32[2,16], index: 10, kind: output, shape index: {}]  }
   0x1   :  { %16 = vsyncpa [#allocation5], 0  ;;  %s3697_s13 = smov [#allocation4]   ;;  %s3627_s17 = scalar_lea.hbm %s4235_s6, 512 }
   0x2   :  { %s42_s14 = sshll.u32 %s3697_s13, 4  ;;  %p3628_p0 = scmp.ne.s32.totalorder %s4235_s6, %s3627_s17  ;;  %s43_s14 = int_to_ptr.vmem [resolvable:$true] %s42_s14 }
   0x3   :  { %p3631_p1 = scmp.lt.u32.totalorder %s3627_s17, %s4235_s6 }
   0x5   :  { %p3633_p2 = pnand %p3631_p1, %p3628_p0 }
   0x7   :  { %3636 = shalt.err (!%p3633_p2)
}
   0x8   :  { %s3637_s22 = scalar_lea.vmem %s43_s14, 512  ;;  %p3642_p4 = scmp.lt.s32.totalorder %s43_s14, %s43_s14 }
   0x9   :  { %p3638_p3 = scmp.ne.s32.totalorder %s43_s14, %s3637_s22  ;;  %p3643_p5 = scmp.lt.s32.totalorder %s3637_s22, %s3637_s22 }
   0xb   :  { %p3644_p6 = por %p3643_p5, %p3642_p4 }
   0xd   :  { %p3645_p7 = pnand %p3644_p6, %p3638_p3 }
   0xf   :  { %3648 = shalt.err (!%p3645_p7)
}
  0x10   :  { %s3698_s23 = smov 128   ;;  %s3699_s24 = smov 8  }
  0x11   :  { %48 = dma.hbm_to_vmem [thread:$0]  %s4235_s6, 512, %s43_s14, [#allocation5], %s3698_s23, %s3698_s23, %s3699_s24  }
  0x12   :  { %s3700_s27 = smov [#allocation2]   ;;  %s3701_s29 = smov [#allocation6]  }
  0x13   :  { %s27_s28 = sshll.u32 %s3700_s27, 4  ;;  %s59_s30 = sshll.u32 %s3701_s29, 4  ;;  %s28_s28 = int_to_ptr.vmem [resolvable:$true] %s27_s28  ;;  %s60_s30 = int_to_ptr.vmem [resolvable:$true] %s59_s30 }
  0x14   :  { %s3649_s13 = scalar_lea.hbm %s4231_s2, 64 }
  0x15   :  { %p3650_p8 = scmp.ne.s32.totalorder %s4231_s2, %s3649_s13  ;;  %p3653_p9 = scmp.lt.u32.totalorder %s3649_s13, %s4231_s2 }
  0x17   :  { %p3655_p10 = pnand %p3653_p9, %p3650_p8 }
  0x19   :  { %3658 = shalt.err (!%p3655_p10)
}
  0x1a   :  { %s3659_s6 = scalar_lea.vmem %s28_s28, 64  ;;  %p3664_p12 = scmp.lt.s32.totalorder %s28_s28, %s28_s28 }
  0x1b   :  { %p3660_p11 = scmp.ne.s32.totalorder %s28_s28, %s3659_s6  ;;  %p3665_p13 = scmp.lt.s32.totalorder %s3659_s6, %s3659_s6 }
  0x1d   :  { %p3666_p0 = por %p3665_p13, %p3664_p12 }
  0x1f   :  { %p3667_p1 = pnand %p3666_p0, %p3660_p11 }
  0x21   :  { %3670 = shalt.err (!%p3667_p1)
}
  0x22   :  { %30 = dma.hbm_to_vmem [thread:$0]  %s4231_s2, 64, %s28_s28, [#allocation3]  }
  0x23   :  { %s3671_s22 = scalar_lea.hbm %s4238_s9, 16 }
  0x24   :  { %p3672_p2 = scmp.ne.s32.totalorder %s4238_s9, %s3671_s22  ;;  %p3675_p3 = scmp.lt.u32.totalorder %s3671_s22, %s4238_s9 }
  0x26   :  { %p3677_p4 = pnand %p3675_p3, %p3672_p2 }
  0x28   :  { %3680 = shalt.err (!%p3677_p4)
}
  0x29   :  { %s3681_s29 = scalar_lea.vmem %s60_s30, 16  ;;  %s3685_s11 = scalar_lea.vmem %s60_s30, 32 }
  0x2a   :  { %p3682_p5 = scmp.ne.s32.totalorder %s60_s30, %s3681_s29  ;;  %p3686_p6 = scmp.lt.s32.totalorder %s60_s30, %s60_s30 }
  0x2b   :  { %p3687_p7 = scmp.lt.s32.totalorder %s3685_s11, %s3681_s29 }
  0x2d   :  { %p3688_p8 = por %p3687_p7, %p3686_p6 }
  0x2f   :  { %p3689_p9 = pnand %p3688_p8, %p3682_p5 }
  0x31   :  { %3692 = shalt.err (!%p3689_p9)
}
  0x32   :  { %62 = dma.hbm_to_vmem [thread:$0]  %s4238_s9, 16, %s60_s30, [#allocation5]  }
  0x33   :  { %3693 = dma.done.wait [#allocation3], 64  }
  0x34   :  { %3694 = vsyncadd [#allocation3], 4294967232 }
  0x35   :  { %3695 = dma.done.wait [#allocation5], 528  }
  0x36   :  { %3696 = vsyncadd [#allocation5], 4294966768  ;;  %vm76_vm0 = vcmask 130048   ;;  %v74_v0 = vld [vmem:[%s4229_s0] sm:$0xff]  ;;  %v75_v1 = vld [vmem:[%s4229_s0 + $0x8] sm:$0xff]  ;;  %vm197_vm1 = vcmask 1043456  }
  0x37   :  { %v72_v2 = vld [vmem:[%s4230_s1] sm:$0xff]  ;;  %v3314_v3 = vpack.c.bf16 %v75_v1, %v74_v0  ;;  %v73_v4 = vld [vmem:[%s4230_s1 + $0x8] sm:$0xff]  ;;  %v3702_v6 = vmov 0.0|0.0   ;;  %vm3703_vm2 = vmmov 0   ;;  %v3704_v7 = vmov 0.0   ;;  %v165_v13 = vld [vmem:[%s4232_s3 + $0x10] sm:$0xff] }
  0x38   :  { %2998 = vmatprep.mubr.msk.f32.mxu0 %vm76_vm0, %v72_v2  ;;  %v158_v5 = vld [vmem:[#allocation2] sm:$0xf]  ;;  %v164_v9 = vld [vmem:[%s4232_s3 + $0x8] sm:$0xff]  ;;  %vm190_vm3 = vcmask 31744   ;;  %v166_v14 = vld [vmem:[%s4232_s3 + $0x18] sm:$0xff]  ;;  %s3705_s25 = smov 64  }
  0x39   :  { %3315 = vmatprep.subr.bf16.mxu0 %v3314_v3  ;;  %3001 = vmatprep.subr.msk.mxu1 %vm197_vm1, %v158_v5  ;;  %v163_v8 = vld [vmem:[%s4232_s3] sm:$0xff]  ;;  %v3832_v15 = vpack.c.bf16 %v166_v14, %v165_v13  ;;  %v168_v35 = vld [vmem:[#allocation4 + $0x8] sm:$0xff]  ;;  %v169_v36 = vld [vmem:[#allocation4 + $0x10] sm:$0xff]  ;;  %vm276_vm4 = vcmask 261120   ;;  %vm1730_vm5 = vcmask 25600   ;;  %vm2083_vm6 = vcmask 58400  }
  0x3a   :  { %3317 = vmatpush3.bf16.msra.mxu0 %v3314_v3  ;;  %3002 = vmatpush3.msk.msra.mxu1 %vm197_vm1, %v158_v5  ;;  %v3823_v11 = vpack.c.bf16 %v164_v9, %v163_v8  ;;  %v2800_v16 = vld [vmem:[%s4233_s4] ss:$0 sm:$0xff]  ;;  %s3706_s4 = smov 32   ;;  %v167_v34 = vld [vmem:[#allocation4] sm:$0xff]  ;;  %v161_v42 = vld [vmem:[%s4234_s5 + $0x10] sm:$0xff]  ;;  %vm2436_vm7 = vcmask 91200  }
  0x3b   :  { %3318 = vmatprep.subr.bf16.mxu1 %v3702_v6  ;;  %3324 = vmatprep.subr.bf16.mxu0 %v3702_v6  ;;  %v3855_v37 = vpack.c.bf16 %v168_v35, %v167_v34  ;;  %v170_v38 = vld [vmem:[#allocation4 + $0x18] sm:$0xff]  ;;  %v160_v40 = vld [vmem:[%s4234_s5 + $0x8] sm:$0xff]  ;;  %vm2789_vm8 = vcmask 124000  }
  0x3c   :  { %v159_v39 = vld [vmem:[%s4234_s5] sm:$0xff]  ;;  %v162_v43 = vld [vmem:[%s4234_s5 + $0x18] sm:$0xff]  ;;  %v3872_v44 = vpack.c.bf16 %v170_v38, %v169_v36 }
  0x3d   :  { %2999 = vmatmul.mubr.msk.f32.vlgmr.msra.gmra.mrb[0].mxu0 %vm76_vm0, %v73_v4  ;;  %v3863_v41 = vpack.c.bf16 %v160_v40, %v159_v39  ;;  %v3876_v45 = vpack.c.bf16 %v162_v43, %v161_v42  ;;  %v3909_v52 = vld [vmem:[%s4236_s7] ss:$0 sm:$0xff] }
  0x3e   :  { %3025 = vmatprep.mubr.msk.f32.mxu0 %vm3703_vm2, %v3704_v7  ;;  %3326 = vmatpush3.bf16.msra.mxu0 %v3855_v37 }
  0x3f   :  { %3327 = vmatprep.subr.bf16.mxu0 %v3702_v6 }
  0x42   :  { %3329 = vmatpush3.bf16.msra.mxu0 %v3872_v44 }
  0x43   :  { %3336 = vmatprep.subr.bf16.mxu0 %v3702_v6 }
  0x45   :  { %3026 = vmatmul.mubr.f32.vlgmr.msra.gmra.mrb[2].mxu0 %v3704_v7 }
  0x46   :  { %3338 = vmatpush3.bf16.msra.mxu0 %v3823_v11  ;;  %3047 = vmatprep.mubr.msk.f32.mxu0 %vm3703_vm2, %v3704_v7 }
  0x47   :  { %3339 = vmatprep.subr.bf16.mxu0 %v3702_v6 }
  0x4a   :  { %3341 = vmatpush3.bf16.msra.mxu0 %v3832_v15 }
  0x4b   :  { %3348 = vmatprep.subr.bf16.mxu0 %v3702_v6 }
 0x110   :  { %v3000_v10 = vpop.f32.mrb[0].mxu0 }
 0x111   :  { %v149_v12 = vpop.f32.mrb[1].mxu0 }
 0x112   :  { %3003 = vmatprep.mubr.msk.f32.mxu1 %vm190_vm3, %v149_v12 }
 0x113   :  { %3004 = vmatmul.mubr.msk.f32.vlgmr.msra.gmra.mrb[0].mxu1 %vm190_vm3, %v3000_v10 }
 0x114   :  { %3320 = vmatpush3.bf16.msra.mxu1 %v3823_v11  ;;  %3014 = vmatprep.mubr.msk.f32.mxu1 %vm3703_vm2, %v3704_v7 }
 0x115   :  { %3321 = vmatprep.subr.bf16.mxu1 %v3702_v6 }
 0x118   :  { %3323 = vmatpush3.bf16.msra.mxu1 %v3832_v15  ;;  %v441_v49 = vpop.f32.mrb[2].mxu0 }
 0x119   :  { %3330 = vmatprep.subr.bf16.mxu1 %v3702_v6  ;;  %v3027_v50 = vpop.f32.mrb[3].mxu0 }
 0x11b   :  { %3015 = vmatmul.mubr.f32.vlgmr.msra.gmra.mrb[2].mxu1 %v3704_v7 }
 0x11c   :  { %3036 = vmatprep.mubr.msk.f32.mxu1 %vm3703_vm2, %v3704_v7  ;;  %3332 = vmatpush3.bf16.msra.mxu1 %v3863_v41 }
 0x11d   :  { %3333 = vmatprep.subr.bf16.mxu1 %v3702_v6 }
 0x120   :  { %3335 = vmatpush3.bf16.msra.mxu1 %v3876_v45 }
 0x121   :  { %3342 = vmatprep.subr.bf16.mxu1 %v3702_v6 }
 0x1e6   :  { %v3005_v17 = vpop.f32.mrb[0].mxu1 }
 0x1e7   :  { %v3845_v18 = vadd.f32 %v3005_v17, %v2800_v16  ;;  %v267_v19 = vpop.f32.mrb[1].mxu1 }
 0x1e8   :  { %v3847_v20 = vadd.f32 %v2800_v16, %v267_v19 }
 0x1ee   :  { %v346_v21 = vpop.f32.mrb[2].mxu1 }
 0x1ef   :  { %v350_v22 = vadd.f32 %v346_v21, %v3847_v20  ;;  %v3016_v23 = vpop.f32.mrb[3].mxu1 }
 0x1f1   :  { %3498 = vtanh.f32 %v350_v22  ;;  %v2804_v25 = vmul.f32 -1.442695, %v350_v22 }
 0x1f3   :  { %3500 = vpow2.f32 %v2804_v25 }
 0x1fb   :  { %v3499_v24 = vpop.eup %3498 }
 0x1fc   :  { %360 = vrot.lane.b32.xlu0 %v3499_v24, %s3705_s25 }
 0x1fd   :  { %v3501_v26 = vpop.eup %3500 }
 0x1fe   :  { %v354_v27 = vadd.f32 1.0, %v3501_v26 }
 0x200   :  { %3502 = vrcp.f32 %v354_v27 }
 0x20a   :  { %v3503_v28 = vpop.eup %3502 }
 0x20b   :  { %v358_v31 = vmul.f32 0.0, %v3503_v28 }
 0x26e   :  { %v361_v29 = vpop.permute.xlu0 %360 }
 0x26f   :  { %v363_v30 = vmul.f32 %v3503_v28, %v361_v29 }
 0x271   :  { %365 = vrot.lane.b32.xlu0 %v363_v30, %s3706_s4 }
 0x2e3   :  { %v366_v32 = vpop.permute.xlu0 %365 }
 0x2e4   :  { %v3852_v33 = vadd.f32 %v366_v32, %v358_v31 }
 0x2e6   :  { %3504 = vtanh.f32 %v3852_v33  ;;  %v627_v14 = vrot.slane %v3852_v33, 6 }
 0x2f0   :  { %v3505_v46 = vpop.eup %3504 }
 0x2f1   :  { %371 = vrot.lane.b32.xlu1 %v3505_v46, %s3705_s25 }
 0x363   :  { %v372_v47 = vpop.permute.xlu1 %371 }
 0x364   :  { %v374_v48 = vmul.f32 %v3503_v28, %v372_v47 }
 0x366   :  { %446 = vrot.lane.b32.xlu1 %v374_v48, %s3706_s4 }
 0x3d8   :  { %v447_v51 = vpop.permute.xlu1 %446 }
 0x3d9   :  { %3037 = vmatmul.mubr.msk.f32.vlgmr.msra.gmra.mrb[4].mxu1 %vm276_vm4, %v447_v51  ;;  %3048 = vmatmul.mubr.msk.f32.vlgmr.msra.gmra.mrb[4].mxu0 %vm276_vm4, %v447_v51 }
 0x3da   :  { %3344 = vmatpush3.bf16.msra.mxu1 %v3855_v37  ;;  %3350 = vmatpush3.bf16.msra.mxu0 %v3863_v41 }
 0x3db   :  { %3345 = vmatprep.subr.bf16.mxu1 %v3702_v6  ;;  %3351 = vmatprep.subr.bf16.mxu0 %v3702_v6 }
 0x3dc   :  { %3058 = vmatprep.mubr.msk.f32.mxu1 %vm3703_vm2, %v3704_v7  ;;  %3069 = vmatprep.mubr.msk.f32.mxu0 %vm3703_vm2, %v3704_v7 }
 0x3de   :  { %3347 = vmatpush3.bf16.msra.mxu1 %v3872_v44  ;;  %3353 = vmatpush3.bf16.msra.mxu0 %v3876_v45 }
 0x3df   :  { %3354 = vmatprep.subr.bf16.mxu1 %v3702_v6  ;;  %3360 = vmatprep.subr.bf16.mxu0 %v3702_v6 }
 0x4ac   :  { %v516_v53 = vpop.f32.mrb[4].mxu1  ;;  %v611_v54 = vpop.f32.mrb[4].mxu0 }
 0x4ad   :  { %v517_v55 = vadd.f32 %v516_v53, %v441_v49  ;;  %v616_v56 = vrot.slane %v611_v54, 6  ;;  %v3038_v57 = vpop.f32.mrb[5].mxu1  ;;  %v3049_v58 = vpop.f32.mrb[5].mxu0 }
 0x4af   :  { %v520_v59 = vadd.f32 %v3909_v52, %v517_v55  ;;  %v618_v60 = vadd.f32 %v616_v56, %v3847_v20 }
 0x4b1   :  { %3506 = vtanh.f32 %v520_v59  ;;  %v2806_v63 = vmul.f32 -1.442695, %v520_v59  ;;  %v2808_v0 = vmul.f32 -1.442695, %v618_v60 }
 0x4b2   :  { %3508 = vtanh.f32 %v618_v60 }
 0x4b3   :  { %3510 = vpow2.f32 %v2806_v63 }
 0x4b4   :  { %3512 = vpow2.f32 %v2808_v0 }
 0x4bb   :  { %v3507_v61 = vpop.eup %3506 }
 0x4bc   :  { %v3509_v62 = vpop.eup %3508  ;;  %530 = vrot.lane.b32.xlu0 %v3507_v61, %s3705_s25 }
 0x4bd   :  { %631 = vrot.lane.b32.xlu1 %v3509_v62, %s3705_s25  ;;  %v3511_v1 = vpop.eup %3510 }
 0x4be   :  { %v3513_v2 = vpop.eup %3512  ;;  %v524_v3 = vadd.f32 1.0, %v3511_v1 }
 0x4bf   :  { %v622_v4 = vadd.f32 1.0, %v3513_v2 }
 0x4c0   :  { %3514 = vrcp.f32 %v524_v3 }
 0x4c1   :  { %3516 = vrcp.f32 %v622_v4 }
 0x4ca   :  { %v3515_v5 = vpop.eup %3514 }
 0x4cb   :  { %v3517_v9 = vpop.eup %3516  ;;  %v528_v16 = vmul.f32 0.0, %v3515_v5 }
 0x4cc   :  { %v629_v17 = vmul.f32 %v3517_v9, %v627_v14 }
 0x52e   :  { %v531_v8 = vpop.permute.xlu0 %530 }
 0x52f   :  { %v632_v10 = vpop.permute.xlu1 %631  ;;  %v533_v12 = vmul.f32 %v3515_v5, %v531_v8 }
 0x530   :  { %v634_v13 = vmul.f32 %v3517_v9, %v632_v10 }
 0x531   :  { %535 = vrot.lane.b32.xlu0 %v533_v12, %s3706_s4 }
 0x532   :  { %636 = vrot.lane.b32.xlu1 %v634_v13, %s3706_s4 }
 0x5a3   :  { %v536_v19 = vpop.permute.xlu0 %535 }
 0x5a4   :  { %v637_v21 = vpop.permute.xlu1 %636  ;;  %v3918_v22 = vadd.f32 %v536_v19, %v528_v16 }
 0x5a5   :  { %v3920_v23 = vadd.f32 %v637_v21, %v629_v17 }
 0x5a6   :  { %3518 = vtanh.f32 %v3918_v22 }
 0x5a7   :  { %3520 = vtanh.f32 %v3920_v23  ;;  %v904_v1 = vrot.slane %v3920_v23, 6 }
 0x5b0   :  { %v3519_v24 = vpop.eup %3518 }
 0x5b1   :  { %v3521_v25 = vpop.eup %3520  ;;  %541 = vrot.lane.b32.xlu0 %v3519_v24, %s3705_s25 }
 0x5b2   :  { %642 = vrot.lane.b32.xlu1 %v3521_v25, %s3705_s25 }
 0x623   :  { %v542_v26 = vpop.permute.xlu0 %541 }
 0x624   :  { %v643_v27 = vpop.permute.xlu1 %642  ;;  %v544_v28 = vmul.f32 %v3515_v5, %v542_v26 }
 0x625   :  { %v645_v29 = vmul.f32 %v3517_v9, %v643_v27 }
 0x626   :  { %647 = vrot.lane.b32.xlu0 %v544_v28, %s3706_s4 }
 0x627   :  { %v722_v30 = vrot.slane %v645_v29, 2 }
 0x629   :  { %723 = vrot.lane.b32.xlu1 %v722_v30, %s3706_s4 }
 0x698   :  { %v648_v31 = vpop.permute.xlu0 %647 }
 0x699   :  { %3059 = vmatmul.mubr.msk.f32.vlgmr.msra.gmra.mrb[6].mxu1 %vm276_vm4, %v648_v31 }
 0x69a   :  { %3356 = vmatpush3.bf16.msra.mxu1 %v3823_v11  ;;  %3080 = vmatprep.mubr.msk.f32.mxu1 %vm3703_vm2, %v3704_v7 }
 0x69b   :  { %v724_v32 = vpop.permute.xlu1 %723  ;;  %3357 = vmatprep.subr.bf16.mxu1 %v3702_v6 }
 0x69c   :  { %3070 = vmatmul.mubr.msk.f32.vlgmr.msra.gmra.mrb[6].mxu0 %vm276_vm4, %v724_v32 }
 0x69d   :  { %3362 = vmatpush3.bf16.msra.mxu0 %v3855_v37  ;;  %3091 = vmatprep.mubr.msk.f32.mxu0 %vm3703_vm2, %v3704_v7 }
 0x69e   :  { %3359 = vmatpush3.bf16.msra.mxu1 %v3832_v15  ;;  %3363 = vmatprep.subr.bf16.mxu0 %v3702_v6 }
 0x69f   :  { %3366 = vmatprep.subr.bf16.mxu1 %v3702_v6 }
 0x6a1   :  { %3081 = vmatmul.mubr.msk.f32.vlgmr.msra.gmra.mrb[8].mxu1 %vm276_vm4, %v724_v32  ;;  %3365 = vmatpush3.bf16.msra.mxu0 %v3872_v44 }
 0x6a2   :  { %3372 = vmatprep.subr.bf16.mxu0 %v3702_v6  ;;  %3368 = vmatpush3.bf16.msra.mxu1 %v3863_v41 }
 0x6a3   :  { %3369 = vmatprep.subr.bf16.mxu1 %v3702_v6  ;;  %3102 = vmatprep.mubr.msk.f32.mxu1 %vm3703_vm2, %v3704_v7 }
 0x6a6   :  { %3371 = vmatpush3.bf16.msra.mxu1 %v3876_v45 }
 0x6a7   :  { %3378 = vmatprep.subr.bf16.mxu1 %v3702_v6 }
 0x76c   :  { %v717_v33 = vpop.f32.mrb[6].mxu1 }
 0x76d   :  { %v3060_v34 = vpop.f32.mrb[7].mxu1 }
 0x76f   :  { %v793_v35 = vpop.f32.mrb[6].mxu0 }
 0x770   :  { %v794_v36 = vadd.f32 %v793_v35, %v717_v33  ;;  %v3071_v38 = vpop.f32.mrb[7].mxu0 }
 0x772   :  { %v797_v39 = vadd.f32 %v3909_v52, %v794_v36 }
 0x774   :  { %3522 = vtanh.f32 %v797_v39  ;;  %v888_v40 = vpop.f32.mrb[8].mxu1  ;;  %v2811_v49 = vmul.f32 -1.442695, %v797_v39 }
 0x775   :  { %v893_v42 = vrot.slane %v888_v40, 4  ;;  %v3082_v43 = vpop.f32.mrb[9].mxu1 }
 0x777   :  { %v895_v46 = vadd.f32 %v893_v42, %v3847_v20 }
 0x779   :  { %3524 = vtanh.f32 %v895_v46  ;;  %v2813_v50 = vmul.f32 -1.442695, %v895_v46 }
 0x77a   :  { %3526 = vpow2.f32 %v2811_v49 }
 0x77b   :  { %3528 = vpow2.f32 %v2813_v50 }
 0x77e   :  { %v3523_v47 = vpop.eup %3522 }
 0x77f   :  { %807 = vrot.lane.b32.xlu0 %v3523_v47, %s3705_s25 }
 0x783   :  { %v3525_v48 = vpop.eup %3524 }
 0x784   :  { %908 = vrot.lane.b32.xlu1 %v3525_v48, %s3705_s25  ;;  %v3527_v51 = vpop.eup %3526 }
 0x785   :  { %v801_v53 = vadd.f32 1.0, %v3527_v51  ;;  %v3529_v54 = vpop.eup %3528 }
 0x786   :  { %v899_v55 = vadd.f32 1.0, %v3529_v54 }
 0x787   :  { %3530 = vrcp.f32 %v801_v53 }
 0x788   :  { %3532 = vrcp.f32 %v899_v55 }
 0x791   :  { %v3531_v56 = vpop.eup %3530 }
 0x792   :  { %v3533_v59 = vpop.eup %3532  ;;  %v805_v62 = vmul.f32 %v3531_v56, %v3918_v22 }
 0x793   :  { %v906_v2 = vmul.f32 %v3533_v59, %v904_v1 }
 0x7f1   :  { %v808_v57 = vpop.permute.xlu0 %807 }
 0x7f2   :  { %v810_v58 = vmul.f32 %v3531_v56, %v808_v57 }
 0x7f4   :  { %812 = vrot.lane.b32.xlu0 %v810_v58, %s3706_s4 }
 0x7f6   :  { %v909_v60 = vpop.permute.xlu1 %908 }
 0x7f7   :  { %v911_v61 = vmul.f32 %v3533_v59, %v909_v60 }
 0x7f9   :  { %913 = vrot.lane.b32.xlu1 %v911_v61, %s3706_s4 }
 0x866   :  { %v813_v63 = vpop.permute.xlu0 %812 }
 0x867   :  { %v3956_v0 = vadd.f32 %v813_v63, %v805_v62 }
 0x869   :  { %3534 = vtanh.f32 %v3956_v0 }
 0x86b   :  { %v914_v3 = vpop.permute.xlu1 %913 }
 0x86c   :  { %v3960_v4 = vadd.f32 %v914_v3, %v906_v2 }
 0x86e   :  { %3536 = vtanh.f32 %v3960_v4  ;;  %v1181_v47 = vrot.slane %v3960_v4, 6 }
 0x873   :  { %v3535_v5 = vpop.eup %3534 }
 0x874   :  { %818 = vrot.lane.b32.xlu0 %v3535_v5, %s3705_s25 }
 0x878   :  { %v3537_v8 = vpop.eup %3536 }
 0x879   :  { %919 = vrot.lane.b32.xlu1 %v3537_v8, %s3705_s25 }
 0x8e6   :  { %v819_v9 = vpop.permute.xlu0 %818 }
 0x8e7   :  { %v821_v10 = vmul.f32 %v3531_v56, %v819_v9 }
 0x8e9   :  { %924 = vrot.lane.b32.xlu0 %v821_v10, %s3706_s4 }
 0x8eb   :  { %v920_v12 = vpop.permute.xlu1 %919 }
 0x8ec   :  { %v922_v13 = vmul.f32 %v3533_v59, %v920_v12 }
 0x8ee   :  { %v999_v14 = vrot.slane %v922_v13, 4 }
 0x8f0   :  { %1000 = vrot.lane.b32.xlu1 %v999_v14, %s3706_s4 }
 0x95b   :  { %v925_v16 = vpop.permute.xlu0 %924 }
 0x95c   :  { %3092 = vmatmul.mubr.msk.f32.vlgmr.msra.gmra.mrb[8].mxu0 %vm276_vm4, %v925_v16 }
 0x95d   :  { %3374 = vmatpush3.bf16.msra.mxu0 %v3823_v11  ;;  %3113 = vmatprep.mubr.msk.f32.mxu0 %vm3703_vm2, %v3704_v7 }
 0x95e   :  { %3375 = vmatprep.subr.bf16.mxu0 %v3702_v6 }
 0x961   :  { %3377 = vmatpush3.bf16.msra.mxu0 %v3832_v15 }
 0x962   :  { %v1001_v17 = vpop.permute.xlu1 %1000  ;;  %3384 = vmatprep.subr.bf16.mxu0 %v3702_v6 }
 0x963   :  { %3103 = vmatmul.mubr.msk.f32.vlgmr.msra.gmra.mrb[10].mxu1 %vm276_vm4, %v1001_v17 }
 0x964   :  { %3114 = vmatmul.mubr.msk.f32.vlgmr.msra.gmra.mrb[10].mxu0 %vm276_vm4, %v1001_v17  ;;  %3380 = vmatpush3.bf16.msra.mxu1 %v3855_v37 }
 0x965   :  { %3381 = vmatprep.subr.bf16.mxu1 %v3702_v6  ;;  %3386 = vmatpush3.bf16.msra.mxu0 %v3863_v41 }
 0x966   :  { %3387 = vmatprep.subr.bf16.mxu0 %v3702_v6  ;;  %3124 = vmatprep.mubr.msk.f32.mxu1 %vm3703_vm2, %v3704_v7 }
 0x967   :  { %3135 = vmatprep.mubr.msk.f32.mxu0 %vm3703_vm2, %v3704_v7 }
 0x968   :  { %3383 = vmatpush3.bf16.msra.mxu1 %v3872_v44 }
 0x969   :  { %3389 = vmatpush3.bf16.msra.mxu0 %v3876_v45  ;;  %3390 = vmatprep.subr.bf16.mxu1 %v3702_v6 }
 0x96a   :  { %3396 = vmatprep.subr.bf16.mxu0 %v3702_v6 }
 0xa2f   :  { %v994_v19 = vpop.f32.mrb[8].mxu0 }
 0xa30   :  { %v3093_v21 = vpop.f32.mrb[9].mxu0 }
 0xa36   :  { %v1070_v22 = vpop.f32.mrb[10].mxu1 }
 0xa37   :  { %v1071_v23 = vadd.f32 %v1070_v22, %v994_v19  ;;  %v1165_v24 = vpop.f32.mrb[10].mxu0  ;;  %v3104_v25 = vpop.f32.mrb[11].mxu1 }
 0xa38   :  { %v1170_v26 = vrot.slane %v1165_v24, 2  ;;  %v3115_v27 = vpop.f32.mrb[11].mxu0 }
 0xa39   :  { %v1074_v28 = vadd.f32 %v3909_v52, %v1071_v23 }
 0xa3a   :  { %v1172_v29 = vadd.f32 %v1170_v26, %v3847_v20 }
 0xa3b   :  { %3538 = vtanh.f32 %v1074_v28  ;;  %v2816_v32 = vmul.f32 -1.442695, %v1074_v28 }
 0xa3c   :  { %3540 = vtanh.f32 %v1172_v29  ;;  %v2818_v33 = vmul.f32 -1.442695, %v1172_v29 }
 0xa3d   :  { %3542 = vpow2.f32 %v2816_v32 }
 0xa3e   :  { %3544 = vpow2.f32 %v2818_v33 }
 0xa45   :  { %v3539_v30 = vpop.eup %3538 }
 0xa46   :  { %v3541_v31 = vpop.eup %3540  ;;  %1084 = vrot.lane.b32.xlu0 %v3539_v30, %s3705_s25 }
 0xa47   :  { %1185 = vrot.lane.b32.xlu1 %v3541_v31, %s3705_s25  ;;  %v3543_v34 = vpop.eup %3542 }
 0xa48   :  { %v3545_v35 = vpop.eup %3544  ;;  %v1078_v36 = vadd.f32 1.0, %v3543_v34 }
 0xa49   :  { %v1176_v38 = vadd.f32 1.0, %v3545_v35 }
 0xa4a   :  { %3546 = vrcp.f32 %v1078_v36 }
 0xa4b   :  { %3548 = vrcp.f32 %v1176_v38 }
 0xa54   :  { %v3547_v39 = vpop.eup %3546 }
 0xa55   :  { %v3549_v40 = vpop.eup %3548  ;;  %v1082_v48 = vmul.f32 %v3547_v39, %v3956_v0 }
 0xa56   :  { %v1183_v49 = vmul.f32 %v3549_v40, %v1181_v47 }
 0xab8   :  { %v1085_v20 = vpop.permute.xlu0 %1084 }
 0xab9   :  { %v1186_v42 = vpop.permute.xlu1 %1185  ;;  %v1087_v43 = vmul.f32 %v3547_v39, %v1085_v20 }
 0xaba   :  { %v1188_v46 = vmul.f32 %v3549_v40, %v1186_v42 }
 0xabb   :  { %1089 = vrot.lane.b32.xlu0 %v1087_v43, %s3706_s4 }
 0xabc   :  { %1190 = vrot.lane.b32.xlu1 %v1188_v46, %s3706_s4 }
 0xb2d   :  { %v1090_v50 = vpop.permute.xlu0 %1089 }
 0xb2e   :  { %v1191_v51 = vpop.permute.xlu1 %1190  ;;  %v3996_v53 = vadd.f32 %v1090_v50, %v1082_v48 }
 0xb2f   :  { %v3998_v54 = vadd.f32 %v1191_v51, %v1183_v49 }
 0xb30   :  { %3550 = vtanh.f32 %v3996_v53 }
 0xb31   :  { %3552 = vtanh.f32 %v3998_v54  ;;  %v1455_v30 = vrot.slane %v3998_v54, 6 }
 0xb3a   :  { %v3551_v55 = vpop.eup %3550 }
 0xb3b   :  { %v3553_v56 = vpop.eup %3552  ;;  %1095 = vrot.lane.b32.xlu0 %v3551_v55, %s3705_s25 }
 0xb3c   :  { %1196 = vrot.lane.b32.xlu1 %v3553_v56, %s3705_s25 }
 0xbad   :  { %v1096_v57 = vpop.permute.xlu0 %1095 }
 0xbae   :  { %v1197_v58 = vpop.permute.xlu1 %1196  ;;  %v1098_v59 = vmul.f32 %v3547_v39, %v1096_v57 }
 0xbaf   :  { %v1199_v60 = vmul.f32 %v3549_v40, %v1197_v58 }
 0xbb0   :  { %1201 = vrot.lane.b32.xlu0 %v1098_v59, %s3706_s4 }
 0xbb1   :  { %v1276_v61 = vrot.slane %v1199_v60, 6 }
 0xbb3   :  { %1277 = vrot.lane.b32.xlu1 %v1276_v61, %s3706_s4 }
 0xc22   :  { %v1202_v62 = vpop.permute.xlu0 %1201 }
 0xc23   :  { %3125 = vmatmul.mubr.msk.f32.vlgmr.msra.gmra.mrb[12].mxu1 %vm276_vm4, %v1202_v62 }
 0xc24   :  { %3392 = vmatpush3.bf16.msra.mxu1 %v3823_v11  ;;  %3146 = vmatprep.mubr.msk.f32.mxu1 %vm3703_vm2, %v3704_v7 }
 0xc25   :  { %v1278_v63 = vpop.permute.xlu1 %1277  ;;  %3393 = vmatprep.subr.bf16.mxu1 %v3702_v6 }
 0xc26   :  { %3136 = vmatmul.mubr.msk.f32.vlgmr.msra.gmra.mrb[12].mxu0 %vm276_vm4, %v1278_v63 }
 0xc27   :  { %3398 = vmatpush3.bf16.msra.mxu0 %v3855_v37  ;;  %3157 = vmatprep.mubr.msk.f32.mxu0 %vm3703_vm2, %v3704_v7 }
 0xc28   :  { %3395 = vmatpush3.bf16.msra.mxu1 %v3832_v15  ;;  %3399 = vmatprep.subr.bf16.mxu0 %v3702_v6 }
 0xc29   :  { %3402 = vmatprep.subr.bf16.mxu1 %v3702_v6 }
 0xc2b   :  { %3147 = vmatmul.mubr.msk.f32.vlgmr.msra.gmra.mrb[14].mxu1 %vm276_vm4, %v1278_v63  ;;  %3401 = vmatpush3.bf16.msra.mxu0 %v3872_v44 }
 0xc2c   :  { %3404 = vmatpush3.bf16.msra.mxu1 %v3863_v41  ;;  %3168 = vmatprep.mubr.msk.f32.mxu1 %vm3703_vm2, %v3704_v7 }
 0xc2d   :  { %3405 = vmatprep.subr.bf16.mxu1 %v3702_v6  ;;  %3408 = vmatprep.subr.bf16.mxu0 %v3702_v6 }
 0xc30   :  { %3407 = vmatpush3.bf16.msra.mxu1 %v3876_v45 }
 0xc31   :  { %3414 = vmatprep.subr.bf16.mxu1 %v3702_v6 }
 0xcf6   :  { %v1271_v0 = vpop.f32.mrb[12].mxu1 }
 0xcf7   :  { %v3126_v1 = vpop.f32.mrb[13].mxu1 }
 0xcf9   :  { %v1347_v2 = vpop.f32.mrb[12].mxu0 }
 0xcfa   :  { %v1348_v3 = vadd.f32 %v1347_v2, %v1271_v0  ;;  %v3137_v4 = vpop.f32.mrb[13].mxu0 }
 0xcfc   :  { %v1351_v5 = vadd.f32 %v3909_v52, %v1348_v3 }
 0xcfe   :  { %3554 = vtanh.f32 %v1351_v5  ;;  %v1442_v8 = vpop.f32.mrb[14].mxu1  ;;  %v2821_v14 = vmul.f32 -1.442695, %v1351_v5 }
 0xcff   :  { %v1446_v9 = vadd.f32 %v1442_v8, %v3845_v18  ;;  %v3148_v10 = vpop.f32.mrb[15].mxu1 }
 0xd01   :  { %3556 = vtanh.f32 %v1446_v9  ;;  %v2823_v16 = vmul.f32 -1.442695, %v1446_v9 }
 0xd02   :  { %3558 = vpow2.f32 %v2821_v14 }
 0xd03   :  { %3560 = vpow2.f32 %v2823_v16 }
 0xd08   :  { %v3555_v12 = vpop.eup %3554 }
 0xd09   :  { %1361 = vrot.lane.b32.xlu1 %v3555_v12, %s3705_s25 }
 0xd0b   :  { %v3557_v13 = vpop.eup %3556 }
 0xd0c   :  { %1459 = vrot.lane.b32.xlu0 %v3557_v13, %s3705_s25  ;;  %v3559_v17 = vpop.eup %3558 }
 0xd0d   :  { %v3561_v19 = vpop.eup %3560  ;;  %v1355_v21 = vadd.f32 1.0, %v3559_v17 }
 0xd0e   :  { %v1450_v22 = vadd.f32 1.0, %v3561_v19 }
 0xd0f   :  { %3562 = vrcp.f32 %v1355_v21 }
 0xd10   :  { %3564 = vrcp.f32 %v1450_v22  ;;  %v173_v22 = vld [vmem:[%s4237_s8] sm:$0xff] }
 0xd19   :  { %v3563_v23 = vpop.eup %3562 }
 0xd1a   :  { %v3565_v26 = vpop.eup %3564  ;;  %v1359_v29 = vmul.f32 %v3563_v23, %v3996_v53 }
 0xd1b   :  { %v1457_v33 = vmul.f32 %v3565_v26, %v1455_v30 }
 0xd7b   :  { %v1362_v24 = vpop.permute.xlu1 %1361 }
 0xd7c   :  { %v1364_v25 = vmul.f32 %v3563_v23, %v1362_v24  ;;  %v175_v24 = vld [vmem:[%s4237_s8 + $0x10] sm:$0xff] }
 0xd7e   :  { %1366 = vrot.lane.b32.xlu1 %v1364_v25, %s3706_s4  ;;  %v1460_v27 = vpop.permute.xlu0 %1459 }
 0xd7f   :  { %v1462_v28 = vmul.f32 %v3565_v26, %v1460_v27 }
 0xd81   :  { %1464 = vrot.lane.b32.xlu0 %v1462_v28, %s3706_s4 }
 0xdf0   :  { %v1367_v31 = vpop.permute.xlu1 %1366 }
 0xdf1   :  { %v4035_v32 = vadd.f32 %v1367_v31, %v1359_v29 }
 0xdf3   :  { %3566 = vtanh.f32 %v4035_v32  ;;  %v1465_v34 = vpop.permute.xlu0 %1464 }
 0xdf4   :  { %v4038_v35 = vadd.f32 %v1465_v34, %v1457_v33 }
 0xdf6   :  { %3568 = vtanh.f32 %v4038_v35  ;;  %v1814_v14 = vrot.slane %v4038_v35, 6 }
 0xdfd   :  { %v3567_v36 = vpop.eup %3566 }
 0xdfe   :  { %1372 = vrot.lane.b32.xlu1 %v3567_v36, %s3705_s25  ;;  %v4128_v36 = vld [vmem:[#allocation6] ss:$0 sm:$0xff] }
 0xe00   :  { %v3569_v38 = vpop.eup %3568 }
 0xe01   :  { %1470 = vrot.lane.b32.xlu0 %v3569_v38, %s3705_s25 }
 0xe70   :  { %v1373_v39 = vpop.permute.xlu1 %1372 }
 0xe71   :  { %v1375_v20 = vmul.f32 %v3563_v23, %v1373_v39  ;;  %v174_v23 = vld [vmem:[%s4237_s8 + $0x8] sm:$0xff] }
 0xe72   :  { %v4086_v25 = vpack.c.bf16 %v174_v23, %v173_v22 }
 0xe73   :  { %1475 = vrot.lane.b32.xlu1 %v1375_v20, %s3706_s4  ;;  %v1471_v40 = vpop.permute.xlu0 %1470 }
 0xe74   :  { %v1473_v42 = vmul.f32 %v3565_v26, %v1471_v40  ;;  %v176_v26 = vld [vmem:[%s4237_s8 + $0x18] sm:$0xff] }
 0xe75   :  { %v4092_v27 = vpack.c.bf16 %v176_v26, %v175_v24 }
 0xe76   :  { %1550 = vrot.lane.b32.xlu0 %v1473_v42, %s3706_s4 }
 0xee5   :  { %v1476_v43 = vpop.permute.xlu1 %1475 }
 0xee6   :  { %3158 = vmatmul.mubr.msk.f32.vlgmr.msra.gmra.mrb[14].mxu0 %vm276_vm4, %v1476_v43 }
 0xee7   :  { %3179 = vmatprep.mubr.msk.f32.mxu0 %vm3703_vm2, %v3704_v7  ;;  %3410 = vmatpush3.bf16.msra.mxu0 %v4086_v25 }
 0xee8   :  { %v1551_v46 = vpop.permute.xlu0 %1550  ;;  %3411 = vmatprep.subr.bf16.mxu0 %v3702_v6 }
 0xee9   :  { %3169 = vmatmul.mubr.msk.f32.vlgmr.msra.gmra.mrb[16].mxu1 %vm276_vm4, %v1551_v46 }
 0xeea   :  { %3416 = vmatpush3.bf16.msra.mxu1 %v3823_v11  ;;  %3190 = vmatprep.mubr.msk.f32.mxu1 %vm3703_vm2, %v3704_v7 }
 0xeeb   :  { %3417 = vmatprep.subr.bf16.mxu1 %v3702_v6  ;;  %3413 = vmatpush3.bf16.msra.mxu0 %v4092_v27 }
 0xeec   :  { %3420 = vmatprep.subr.bf16.mxu0 %v3702_v6 }
 0xeee   :  { %3419 = vmatpush3.bf16.msra.mxu1 %v3832_v15 }
 0xeef   :  { %3426 = vmatprep.subr.bf16.mxu1 %v3702_v6 }
 0xef1   :  { %3191 = vmatmul.mubr.msk.f32.vlgmr.msra.gmra.mrb[18].mxu1 %vm276_vm4, %v1551_v46 }
 0xef2   :  { %3428 = vmatpush3.bf16.msra.mxu1 %v3863_v41  ;;  %3212 = vmatprep.mubr.msk.f32.mxu1 %vm3703_vm2, %v3704_v7 }
 0xef3   :  { %3429 = vmatprep.subr.bf16.mxu1 %v3702_v6 }
 0xef6   :  { %3431 = vmatpush3.bf16.msra.mxu1 %v3876_v45 }
 0xef7   :  { %3438 = vmatprep.subr.bf16.mxu1 %v3702_v6 }
 0xfb9   :  { %v1545_v47 = vpop.f32.mrb[14].mxu0 }
 0xfba   :  { %v3159_v48 = vpop.f32.mrb[15].mxu0 }
 0xfbc   :  { %v1620_v49 = vpop.f32.mrb[16].mxu1 }
 0xfbd   :  { %v1621_v50 = vadd.f32 %v1620_v49, %v1545_v47  ;;  %v3170_v51 = vpop.f32.mrb[17].mxu1 }
 0xfbf   :  { %v1624_v53 = vadd.f32 %v3909_v52, %v1621_v50 }
 0xfc1   :  { %3570 = vtanh.f32 %v1624_v53  ;;  %v2826_v60 = vmul.f32 -1.442695, %v1624_v53 }
 0xfc4   :  { %v1798_v54 = vpop.f32.mrb[18].mxu1 }
 0xfc5   :  { %v1803_v55 = vrot.slane %v1798_v54, 6  ;;  %v3192_v56 = vpop.f32.mrb[19].mxu1 }
 0xfc7   :  { %v1805_v57 = vadd.f32 %v1803_v55, %v3845_v18 }
 0xfc9   :  { %3572 = vtanh.f32 %v1805_v57  ;;  %v2830_v61 = vmul.f32 -1.442695, %v1805_v57 }
 0xfca   :  { %3574 = vpow2.f32 %v2826_v60 }
 0xfcb   :  { %v3571_v58 = vpop.eup %3570  ;;  %3576 = vpow2.f32 %v2830_v61 }
 0xfcc   :  { %1634 = vrot.lane.b32.xlu0 %v3571_v58, %s3705_s25 }
 0xfd3   :  { %v3573_v59 = vpop.eup %3572 }
 0xfd4   :  { %1818 = vrot.lane.b32.xlu1 %v3573_v59, %s3705_s25  ;;  %v3575_v62 = vpop.eup %3574 }
 0xfd5   :  { %v1628_v63 = vadd.f32 1.0, %v3575_v62  ;;  %v3577_v0 = vpop.eup %3576 }
 0xfd6   :  { %v1809_v1 = vadd.f32 1.0, %v3577_v0 }
 0xfd7   :  { %3578 = vrcp.f32 %v1628_v63 }
 0xfd8   :  { %3580 = vrcp.f32 %v1809_v1 }
 0xfe1   :  { %v3579_v2 = vpop.eup %3578 }
 0xfe2   :  { %v3581_v5 = vpop.eup %3580  ;;  %v1632_v10 = vmul.f32 %v3579_v2, %v4035_v32 }
 0xfe3   :  { %v1816_v16 = vmul.f32 %v3581_v5, %v1814_v14 }
0x103e   :  { %v1635_v3 = vpop.permute.xlu0 %1634 }
0x103f   :  { %v1637_v4 = vmul.f32 %v3579_v2, %v1635_v3 }
0x1041   :  { %1639 = vrot.lane.b32.xlu0 %v1637_v4, %s3706_s4 }
0x1046   :  { %v1819_v8 = vpop.permute.xlu1 %1818 }
0x1047   :  { %v1821_v9 = vmul.f32 %v3581_v5, %v1819_v8 }
0x1049   :  { %1823 = vrot.lane.b32.xlu1 %v1821_v9, %s3706_s4 }
0x10b3   :  { %v1640_v12 = vpop.permute.xlu0 %1639 }
0x10b4   :  { %v4069_v13 = vadd.f32 %v1640_v12, %v1632_v10 }
0x10b6   :  { %3582 = vtanh.f32 %v4069_v13 }
0x10bb   :  { %v1824_v17 = vpop.permute.xlu1 %1823 }
0x10bc   :  { %v4073_v19 = vadd.f32 %v1824_v17, %v1816_v16 }
0x10be   :  { %3584 = vtanh.f32 %v4073_v19  ;;  %v2167_v9 = vrot.slane %v4073_v19, 6 }
0x10c0   :  { %v3583_v21 = vpop.eup %3582 }
0x10c1   :  { %1645 = vrot.lane.b32.xlu0 %v3583_v21, %s3705_s25 }
0x10c8   :  { %v3585_v28 = vpop.eup %3584 }
0x10c9   :  { %1829 = vrot.lane.b32.xlu1 %v3585_v28, %s3705_s25 }
0x1133   :  { %v1646_v29 = vpop.permute.xlu0 %1645 }
0x1134   :  { %v1648_v30 = vmul.f32 %v3579_v2, %v1646_v29 }
0x1136   :  { %1656 = vrot.lane.b32.xlu0 %v1648_v30, %s3706_s4 }
0x113b   :  { %v1830_v31 = vpop.permute.xlu1 %1829 }
0x113c   :  { %v1832_v32 = vmul.f32 %v3581_v5, %v1830_v31 }
0x113e   :  { %v1904_v33 = vrot.slane %v1832_v32, 2 }
0x1140   :  { %1905 = vrot.lane.b32.xlu1 %v1904_v33, %s3706_s4 }
0x11a8   :  { %v1657_v34 = vpop.permute.xlu0 %1656 }
0x11a9   :  { %3180 = vmatmul.mubr.msk.f32.vlgmr.msra.gmra.mrb[16].mxu0 %vm276_vm4, %v1657_v34 }
0x11aa   :  { %3422 = vmatpush3.bf16.msra.mxu0 %v3855_v37  ;;  %3201 = vmatprep.mubr.msk.f32.mxu0 %vm3703_vm2, %v3704_v7 }
0x11ab   :  { %3423 = vmatprep.subr.bf16.mxu0 %v3702_v6 }
0x11ae   :  { %3425 = vmatpush3.bf16.msra.mxu0 %v3872_v44 }
0x11af   :  { %3432 = vmatprep.subr.bf16.mxu0 %v3702_v6 }
0x11b1   :  { %3202 = vmatmul.mubr.msk.f32.vlgmr.msra.gmra.mrb[18].mxu0 %vm276_vm4, %v1657_v34 }
0x11b2   :  { %v1906_v35 = vpop.permute.xlu1 %1905  ;;  %3434 = vmatpush3.bf16.msra.mxu0 %v4086_v25  ;;  %3223 = vmatprep.mubr.msk.f32.mxu0 %vm3703_vm2, %v3704_v7 }
0x11b3   :  { %3213 = vmatmul.mubr.msk.f32.vlgmr.msra.gmra.mrb[20].mxu1 %vm276_vm4, %v1906_v35  ;;  %3435 = vmatprep.subr.bf16.mxu0 %v3702_v6 }
0x11b4   :  { %3440 = vmatpush3.bf16.msra.mxu1 %v3823_v11  ;;  %3234 = vmatprep.mubr.msk.f32.mxu1 %vm3703_vm2, %v3704_v7 }
0x11b5   :  { %3441 = vmatprep.subr.bf16.mxu1 %v3702_v6 }
0x11b6   :  { %3437 = vmatpush3.bf16.msra.mxu0 %v4092_v27 }
0x11b7   :  { %3444 = vmatprep.subr.bf16.mxu0 %v3702_v6 }
0x11b8   :  { %3443 = vmatpush3.bf16.msra.mxu1 %v3832_v15 }
0x11b9   :  { %3450 = vmatprep.subr.bf16.mxu1 %v3702_v6 }
0x11bb   :  { %3235 = vmatmul.mubr.msk.f32.vlgmr.msra.gmra.mrb[22].mxu1 %vm276_vm4, %v1906_v35 }
0x11bc   :  { %3452 = vmatpush3.bf16.msra.mxu1 %v3863_v41  ;;  %3256 = vmatprep.mubr.msk.f32.mxu1 %vm3703_vm2, %v3704_v7 }
0x11bd   :  { %3453 = vmatprep.subr.bf16.mxu1 %v3702_v6 }
0x11c0   :  { %3455 = vmatpush3.bf16.msra.mxu1 %v3876_v45 }
0x11c1   :  { %3462 = vmatprep.subr.bf16.mxu1 %v3702_v6 }
0x127c   :  { %v1726_v38 = vpop.f32.mrb[16].mxu0 }
0x127d   :  { %v1727_v39 = vadd.f32 %v4128_v36, %v1726_v38  ;;  %v3181_v20 = vpop.f32.mrb[17].mxu0 }
0x127f   :  { %1731 = vst.msk [vmem:[%s4239_s10] sm:$0x3] %vm1730_vm5, %v1727_v39 }
0x1284   :  { %v1899_v40 = vpop.f32.mrb[18].mxu0 }
0x1285   :  { %v3203_v42 = vpop.f32.mrb[19].mxu0 }
0x1286   :  { %v1975_v43 = vpop.f32.mrb[20].mxu1 }
0x1287   :  { %v1976_v46 = vadd.f32 %v1975_v43, %v1899_v40  ;;  %v3214_v47 = vpop.f32.mrb[21].mxu1 }
0x1289   :  { %v1979_v48 = vadd.f32 %v3909_v52, %v1976_v46 }
0x128b   :  { %3586 = vtanh.f32 %v1979_v48  ;;  %v2833_v56 = vmul.f32 -1.442695, %v1979_v48 }
0x128e   :  { %v2151_v49 = vpop.f32.mrb[22].mxu1 }
0x128f   :  { %v2156_v50 = vrot.slane %v2151_v49, 4  ;;  %v3236_v51 = vpop.f32.mrb[23].mxu1 }
0x1291   :  { %v2158_v53 = vadd.f32 %v2156_v50, %v3845_v18 }
0x1293   :  { %3588 = vtanh.f32 %v2158_v53  ;;  %v2836_v57 = vmul.f32 -1.442695, %v2158_v53 }
0x1294   :  { %3590 = vpow2.f32 %v2833_v56 }
0x1295   :  { %v3587_v54 = vpop.eup %3586  ;;  %3592 = vpow2.f32 %v2836_v57 }
0x1296   :  { %1989 = vrot.lane.b32.xlu0 %v3587_v54, %s3705_s25 }
0x129d   :  { %v3589_v55 = vpop.eup %3588 }
0x129e   :  { %2171 = vrot.lane.b32.xlu1 %v3589_v55, %s3705_s25  ;;  %v3591_v58 = vpop.eup %3590 }
0x129f   :  { %v1983_v59 = vadd.f32 1.0, %v3591_v58  ;;  %v3593_v60 = vpop.eup %3592 }
0x12a0   :  { %v2162_v61 = vadd.f32 1.0, %v3593_v60 }
0x12a1   :  { %3594 = vrcp.f32 %v1983_v59 }
0x12a2   :  { %3596 = vrcp.f32 %v2162_v61 }
0x12ab   :  { %v3595_v62 = vpop.eup %3594 }
0x12ac   :  { %v3597_v1 = vpop.eup %3596  ;;  %v1987_v4 = vmul.f32 %v3595_v62, %v4069_v13 }
0x12ad   :  { %v2169_v10 = vmul.f32 %v3597_v1, %v2167_v9 }
0x1308   :  { %v1990_v63 = vpop.permute.xlu0 %1989 }
0x1309   :  { %v1992_v0 = vmul.f32 %v3595_v62, %v1990_v63 }
0x130b   :  { %1994 = vrot.lane.b32.xlu0 %v1992_v0, %s3706_s4 }
0x1310   :  { %v2172_v2 = vpop.permute.xlu1 %2171 }
0x1311   :  { %v2174_v3 = vmul.f32 %v3597_v1, %v2172_v2 }
0x1313   :  { %2176 = vrot.lane.b32.xlu1 %v2174_v3, %s3706_s4 }
0x137d   :  { %v1995_v5 = vpop.permute.xlu0 %1994 }
0x137e   :  { %v4141_v8 = vadd.f32 %v1995_v5, %v1987_v4 }
0x1380   :  { %3598 = vtanh.f32 %v4141_v8 }
0x1385   :  { %v2177_v12 = vpop.permute.xlu1 %2176 }
0x1386   :  { %v4145_v14 = vadd.f32 %v2177_v12, %v2169_v10 }
0x1388   :  { %3600 = vtanh.f32 %v4145_v14  ;;  %v2520_v56 = vrot.slane %v4145_v14, 6 }
0x138a   :  { %v3599_v16 = vpop.eup %3598 }
0x138b   :  { %2000 = vrot.lane.b32.xlu0 %v3599_v16, %s3705_s25 }
0x1392   :  { %v3601_v17 = vpop.eup %3600 }
0x1393   :  { %2182 = vrot.lane.b32.xlu1 %v3601_v17, %s3705_s25 }
0x13fd   :  { %v2001_v13 = vpop.permute.xlu0 %2000 }
0x13fe   :  { %v2003_v21 = vmul.f32 %v3595_v62, %v2001_v13 }
0x1400   :  { %2005 = vrot.lane.b32.xlu0 %v2003_v21, %s3706_s4 }
0x1405   :  { %v2183_v22 = vpop.permute.xlu1 %2182 }
0x1406   :  { %v2185_v23 = vmul.f32 %v3597_v1, %v2183_v22 }
0x1408   :  { %v2257_v24 = vrot.slane %v2185_v23, 4 }
0x140a   :  { %2258 = vrot.lane.b32.xlu1 %v2257_v24, %s3706_s4 }
0x1472   :  { %v2006_v19 = vpop.permute.xlu0 %2005 }
0x1473   :  { %3224 = vmatmul.mubr.msk.f32.vlgmr.msra.gmra.mrb[20].mxu0 %vm276_vm4, %v2006_v19 }
0x1474   :  { %3446 = vmatpush3.bf16.msra.mxu0 %v3855_v37  ;;  %3245 = vmatprep.mubr.msk.f32.mxu0 %vm3703_vm2, %v3704_v7 }
0x1475   :  { %3447 = vmatprep.subr.bf16.mxu0 %v3702_v6 }
0x1478   :  { %3449 = vmatpush3.bf16.msra.mxu0 %v3872_v44 }
0x1479   :  { %3456 = vmatprep.subr.bf16.mxu0 %v3702_v6 }
0x147b   :  { %3246 = vmatmul.mubr.msk.f32.vlgmr.msra.gmra.mrb[22].mxu0 %vm276_vm4, %v2006_v19 }
0x147c   :  { %v2259_v26 = vpop.permute.xlu1 %2258  ;;  %3458 = vmatpush3.bf16.msra.mxu0 %v4086_v25  ;;  %3267 = vmatprep.mubr.msk.f32.mxu0 %vm3703_vm2, %v3704_v7 }
0x147d   :  { %3257 = vmatmul.mubr.msk.f32.vlgmr.msra.gmra.mrb[24].mxu1 %vm276_vm4, %v2259_v26  ;;  %3459 = vmatprep.subr.bf16.mxu0 %v3702_v6 }
0x147e   :  { %3464 = vmatpush3.bf16.msra.mxu1 %v3823_v11  ;;  %3278 = vmatprep.mubr.msk.f32.mxu1 %vm3703_vm2, %v3704_v7 }
0x147f   :  { %3465 = vmatprep.subr.bf16.mxu1 %v3702_v6 }
0x1480   :  { %3461 = vmatpush3.bf16.msra.mxu0 %v4092_v27 }
0x1481   :  { %3468 = vmatprep.subr.bf16.mxu0 %v3702_v6 }
0x1482   :  { %3467 = vmatpush3.bf16.msra.mxu1 %v3832_v15 }
0x1483   :  { %3474 = vmatprep.subr.bf16.mxu1 %v3702_v6 }
0x1485   :  { %3279 = vmatmul.mubr.msk.f32.vlgmr.msra.gmra.mrb[26].mxu1 %vm276_vm4, %v2259_v26 }
0x1486   :  { %3476 = vmatpush3.bf16.msra.mxu1 %v3863_v41  ;;  %3300 = vmatprep.mubr.msk.f32.mxu1 %vm3703_vm2, %v3704_v7 }
0x1487   :  { %3477 = vmatprep.subr.bf16.mxu1 %v3702_v6 }
0x148a   :  { %3479 = vmatpush3.bf16.msra.mxu1 %v3876_v45 }
0x1546   :  { %v4179_v11 = vpop.f32.mrb[20].mxu0 }
0x1547   :  { %v3225_v28 = vpop.f32.mrb[21].mxu0  ;;  %v2076_v26 = vadd.f32 %v4128_v36, %v4179_v11 }
0x154e   :  { %v2252_v29 = vpop.f32.mrb[22].mxu0 }
0x154f   :  { %v3247_v30 = vpop.f32.mrb[23].mxu0 }
0x1550   :  { %v2328_v31 = vpop.f32.mrb[24].mxu1 }
0x1551   :  { %v2329_v15 = vadd.f32 %v2328_v31, %v2252_v29  ;;  %v3258_v32 = vpop.f32.mrb[25].mxu1 }
0x1553   :  { %v2332_v33 = vadd.f32 %v3909_v52, %v2329_v15 }
0x1555   :  { %3602 = vtanh.f32 %v2332_v33  ;;  %v2839_v20 = vmul.f32 -1.442695, %v2332_v33 }
0x1558   :  { %v2504_v34 = vpop.f32.mrb[26].mxu1 }
0x1559   :  { %v2509_v41 = vrot.slane %v2504_v34, 2  ;;  %v3280_v35 = vpop.f32.mrb[27].mxu1 }
0x155b   :  { %v2511_v38 = vadd.f32 %v2509_v41, %v3845_v18 }
0x155d   :  { %3604 = vtanh.f32 %v2511_v38  ;;  %v2842_v40 = vmul.f32 -1.442695, %v2511_v38 }
0x155e   :  { %3606 = vpow2.f32 %v2839_v20 }
0x155f   :  { %v3603_v39 = vpop.eup %3602  ;;  %3608 = vpow2.f32 %v2842_v40 }
0x1560   :  { %2342 = vrot.lane.b32.xlu0 %v3603_v39, %s3705_s25 }
0x1567   :  { %v3605_v45 = vpop.eup %3604 }
0x1568   :  { %2524 = vrot.lane.b32.xlu1 %v3605_v45, %s3705_s25  ;;  %v3607_v42 = vpop.eup %3606 }
0x1569   :  { %v2336_v43 = vadd.f32 1.0, %v3607_v42  ;;  %v3609_v52 = vpop.eup %3608 }
0x156a   :  { %v2515_v46 = vadd.f32 1.0, %v3609_v52 }
0x156b   :  { %3610 = vrcp.f32 %v2336_v43 }
0x156c   :  { %3612 = vrcp.f32 %v2515_v46 }
0x1575   :  { %v3611_v47 = vpop.eup %3610 }
0x1576   :  { %v3613_v49 = vpop.eup %3612  ;;  %v2340_v53 = vmul.f32 %v3611_v47, %v4141_v8 }
0x1577   :  { %v2522_v57 = vmul.f32 %v3613_v49, %v2520_v56 }
0x15d2   :  { %v2343_v48 = vpop.permute.xlu0 %2342 }
0x15d3   :  { %v2345_v18 = vmul.f32 %v3611_v47, %v2343_v48 }
0x15d5   :  { %2347 = vrot.lane.b32.xlu0 %v2345_v18, %s3706_s4 }
0x15da   :  { %v2525_v50 = vpop.permute.xlu1 %2524 }
0x15db   :  { %v2527_v51 = vmul.f32 %v3613_v49, %v2525_v50 }
0x15dd   :  { %2529 = vrot.lane.b32.xlu1 %v2527_v51, %s3706_s4 }
0x1647   :  { %v2348_v54 = vpop.permute.xlu0 %2347 }
0x1648   :  { %v2350_v55 = vadd.f32 %v2348_v54, %v2340_v53 }
0x164a   :  { %3614 = vtanh.f32 %v2350_v55 }
0x164f   :  { %v2530_v58 = vpop.permute.xlu1 %2529 }
0x1650   :  { %v2532_v59 = vadd.f32 %v2530_v58, %v2522_v57 }
0x1652   :  { %3616 = vtanh.f32 %v2532_v59 }
0x1654   :  { %v3615_v60 = vpop.eup %3614 }
0x1655   :  { %2353 = vrot.lane.b32.xlu0 %v3615_v60, %s3705_s25 }
0x165c   :  { %v3617_v61 = vpop.eup %3616 }
0x165d   :  { %2535 = vrot.lane.b32.xlu1 %v3617_v61, %s3705_s25 }
0x16c7   :  { %v2354_v62 = vpop.permute.xlu0 %2353 }
0x16c8   :  { %v2356_v63 = vmul.f32 %v3611_v47, %v2354_v62 }
0x16ca   :  { %2358 = vrot.lane.b32.xlu0 %v2356_v63, %s3706_s4 }
0x16cf   :  { %v2536_v0 = vpop.permute.xlu1 %2535 }
0x16d0   :  { %v2538_v1 = vmul.f32 %v3613_v49, %v2536_v0 }
0x16d2   :  { %v2610_v2 = vrot.slane %v2538_v1, 6 }
0x16d4   :  { %2611 = vrot.lane.b32.xlu1 %v2610_v2, %s3706_s4 }
0x173c   :  { %v2359_v3 = vpop.permute.xlu0 %2358 }
0x173d   :  { %3268 = vmatmul.mubr.msk.f32.vlgmr.msra.gmra.mrb[24].mxu0 %vm276_vm4, %v2359_v3 }
0x173e   :  { %3470 = vmatpush3.bf16.msra.mxu0 %v3855_v37  ;;  %3289 = vmatprep.mubr.msk.f32.mxu0 %vm3703_vm2, %v3704_v7 }
0x173f   :  { %3471 = vmatprep.subr.bf16.mxu0 %v3702_v6 }
0x1742   :  { %3473 = vmatpush3.bf16.msra.mxu0 %v3872_v44 }
0x1743   :  { %3480 = vmatprep.subr.bf16.mxu0 %v3702_v6 }
0x1745   :  { %3290 = vmatmul.mubr.msk.f32.vlgmr.msra.gmra.mrb[26].mxu0 %vm276_vm4, %v2359_v3 }
0x1746   :  { %v2612_v4 = vpop.permute.xlu1 %2611  ;;  %3482 = vmatpush3.bf16.msra.mxu0 %v4086_v25  ;;  %3311 = vmatprep.mubr.msk.f32.mxu0 %vm3703_vm2, %v3704_v7  ;;  %v3626_v25 = vld [vmem:[%s4236_s7] ss:$0 sm:$0xff]  ;;  %s3707_s7 = smov 4  }
0x1747   :  { %3301 = vmatmul.mubr.msk.f32.vlgmr.msra.gmra.mrb[28].mxu1 %vm276_vm4, %v2612_v4  ;;  %3483 = vmatprep.subr.bf16.mxu0 %v3702_v6 }
0x174a   :  { %3485 = vmatpush3.bf16.msra.mxu0 %v4092_v27 }
0x1810   :  { %v2428_v37 = vpop.f32.mrb[24].mxu0 }
0x1811   :  { %v3269_v5 = vpop.f32.mrb[25].mxu0  ;;  %v2429_v31 = vadd.f32 %v4128_v36, %v2428_v37 }
0x1818   :  { %v2605_v8 = vpop.f32.mrb[26].mxu0 }
0x1819   :  { %v3291_v44 = vpop.f32.mrb[27].mxu0 }
0x181a   :  { %v2681_v9 = vpop.f32.mrb[28].mxu1 }
0x181b   :  { %v2682_v10 = vadd.f32 %v2681_v9, %v2605_v8  ;;  %v3302_v12 = vpop.f32.mrb[29].mxu1 }
0x181d   :  { %v2685_v14 = vadd.f32 %v3626_v25, %v2682_v10 }
0x181f   :  { %3618 = vtanh.f32 %v2685_v14  ;;  %v2845_v16 = vmul.f32 -1.442695, %v2685_v14 }
0x1821   :  { %3620 = vpow2.f32 %v2845_v16 }
0x1829   :  { %v3619_v7 = vpop.eup %3618 }
0x182a   :  { %2695 = vrot.lane.b32.xlu0 %v3619_v7, %s3705_s25 }
0x182b   :  { %v3621_v6 = vpop.eup %3620 }
0x182c   :  { %v2689_v27 = vadd.f32 1.0, %v3621_v6 }
0x182e   :  { %3622 = vrcp.f32 %v2689_v27 }
0x1838   :  { %v3623_v17 = vpop.eup %3622 }
0x1839   :  { %v2693_v22 = vmul.f32 %v3623_v17, %v2350_v55 }
0x189c   :  { %v2696_v13 = vpop.permute.xlu0 %2695 }
0x189d   :  { %v2698_v21 = vmul.f32 %v3623_v17, %v2696_v13 }
0x189f   :  { %2700 = vrot.lane.b32.xlu1 %v2698_v21, %s3706_s4 }
0x1911   :  { %v2701_v23 = vpop.permute.xlu1 %2700 }
0x1912   :  { %v2703_v24 = vadd.f32 %v2701_v23, %v2693_v22 }
0x1914   :  { %3624 = vtanh.f32 %v2703_v24 }
0x191e   :  { %v3625_v19 = vpop.eup %3624 }
0x191f   :  { %2706 = vrot.lane.b32.xlu0 %v3625_v19, %s3705_s25  ;;  %s3708_s25 = smov 12  }
0x1923   :  { %2080 = vrot.lane.b32.xlu0 %v2076_v26, %s3707_s7 }
0x1991   :  { %v2707_v28 = vpop.permute.xlu0 %2706 }
0x1992   :  { %v2709_v29 = vmul.f32 %v3623_v17, %v2707_v28 }
0x1994   :  { %2711 = vrot.lane.b32.xlu1 %v2709_v29, %s3706_s4 }
0x1995   :  { %v2081_v30 = vpop.permute.xlu0 %2080 }
0x1996   :  { %2084 = vst.msk [vmem:[%s4239_s10] sm:$0x3] %vm2083_vm6, %v2081_v30 }
0x1998   :  { %2433 = vrot.lane.b32.xlu1 %v2429_v31, %s3699_s24 }
0x1a06   :  { %v2712_v15 = vpop.permute.xlu1 %2711 }
0x1a07   :  { %3312 = vmatmul.mubr.msk.f32.vlgmr.msra.gmra.mrb[28].mxu0 %vm276_vm4, %v2712_v15 }
0x1a0a   :  { %v2434_v11 = vpop.permute.xlu1 %2433 }
0x1a0b   :  { %2437 = vst.msk [vmem:[%s4239_s10] sm:$0x3] %vm2436_vm7, %v2434_v11 }
0x1ada   :  { %v2781_v32 = vpop.f32.mrb[28].mxu0 }
0x1adb   :  { %v2782_v33 = vadd.f32 %v4128_v36, %v2781_v32  ;;  %v3313_v34 = vpop.f32.mrb[29].mxu0 }
0x1add   :  { %2786 = vrot.lane.b32.xlu0 %v2782_v33, %s3708_s25 }
0x1b4f   :  { %v2787_v41 = vpop.permute.xlu0 %2786 }
0x1b50   :  { %2790 = vst.msk [vmem:[%s4239_s10] sm:$0x3] %vm2789_vm8, %v2787_v41 }
0x1b51   :  { %2795 = vsyncpa [#allocation3], 1 }
0x1b52   :  { %2796 = vsyncpa [#allocation5], 1 }

</bundles_post_ra>
